<compile_context>
chip_gen: v7x
topology: tpu7x:2x2x1
jax: 0.10.0
libtpu: 0.0.40
codegen_flags: <defaults>
</compile_context>

<pallas_src>
import jax
import jax.numpy as jnp
import numpy as np
from jax.experimental import pallas as pl
from jax.experimental.pallas import tpu as pltpu


# ----------------------------- Pallas kernel --------------------------------
def attn_decoder_kernel(
    tok_ref,      # (T, B) int32 scalar-prefetch token ids (SMEM)
    emb_ref,      # (V, H)  f32   embedding table (VMEM-resident)
    ctx0_ref,     # (B, H)  f32   initial context
    h0_ref,       # (B, H)  f32   initial hidden
    enc_ref,      # (B, S, H) f32 encoder outputs (resident)
    wi_ref,       # (2H, 3H) bf16 fused input->gates weights  [r | z | n]
    wh_ref,       # (H, 3H)  bf16 fused hidden->gates weights [r | z | n]
    bi_ref,       # (1, 3H)  f32
    bh_ref,       # (1, 3H)  f32
    wout_ref,     # (2H, V)  bf16 fused output proj (rows = [h_new ; context])
    bout_ref,     # (1, V)   f32
    out_ref,      # (1, B, V) per-step log-softmax output
    ctxs_ref,     # (1, B, H) per-step new context
    hids_ref,     # (1, B, H) per-step new hidden
    attns_ref,    # (1, B, S) per-step attention weights
    x_scr,        # VMEM (B, 2H) f32  rnn input  = [emb | prev ctx]
    h_scr,        # VMEM (B, H)  f32  carried hidden
    ctx_scr,      # VMEM (B, H)  f32  carried context
):
    f32 = jnp.float32
    bf16 = jnp.bfloat16
    t = pl.program_id(0)
    B, H = h_scr.shape

    # ---- initialize carried state at the first decode step ----
    @pl.when(t == 0)
    def _():
        h_scr[...] = h0_ref[...]
        ctx_scr[...] = ctx0_ref[...]

    # ---- embedding gather: one dynamic row per stream from the resident table ----
    for b in range(B):  # static unrolled loop, B is small
        tok = tok_ref[t, b]
        x_scr[pl.ds(b, 1), 0:H] = emb_ref[pl.ds(tok, 1), :].astype(f32)
    # rnn_input = concat(embedding(word), last_context)
    x_scr[:, H:2 * H] = ctx_scr[...]

    h = h_scr[...]                                   # (B, H) f32
    x_bf = x_scr[...].astype(bf16)                   # (B, 2H) bf16 MXU operand

    # ---- GRU cell, fused gate matmuls (PyTorch gate order r, z, n) ----
    gi = jnp.dot(x_bf, wi_ref[...], preferred_element_type=f32) + bi_ref[...]
    gh = jnp.dot(h.astype(bf16), wh_ref[...], preferred_element_type=f32) + bh_ref[...]
    r = jax.nn.sigmoid(gi[:, 0:H] + gh[:, 0:H])
    z = jax.nn.sigmoid(gi[:, H:2 * H] + gh[:, H:2 * H])
    n = jnp.tanh(gi[:, 2 * H:3 * H] + r * gh[:, 2 * H:3 * H])
    h_new = (1.0 - z) * n + z * h                    # (B, H) f32

    # ---- dot attention on the VPU/XLU (no tiny MXU matmuls on the chain) ----
    enc = enc_ref[...]                               # (B, S, H) f32
    scores = jnp.sum(enc * h_new[:, None, :], axis=-1)          # (B, S)
    m = jnp.max(scores, axis=-1, keepdims=True)
    e = jnp.exp(scores - m)
    inv = pl.reciprocal(jnp.sum(e, axis=-1, keepdims=True), approx=True)
    attn = e * inv                                               # (B, S)
    ctx = jnp.sum(attn[:, :, None] * enc, axis=1)                # (B, H)

    # ---- output = log_softmax(Linear(concat(h_new, ctx))) ----
    hc = jnp.concatenate([h_new, ctx], axis=-1).astype(bf16)     # (B, 2H)
    logits = jnp.dot(hc, wout_ref[...], preferred_element_type=f32) + bout_ref[...]
    lmax = jnp.max(logits, axis=-1, keepdims=True)
    lse = lmax + jnp.log(jnp.sum(jnp.exp(logits - lmax), axis=-1, keepdims=True))

    out_ref[...] = (logits - lse)[None].astype(out_ref.dtype)
    ctxs_ref[...] = ctx[None].astype(ctxs_ref.dtype)
    hids_ref[...] = h_new[None].astype(hids_ref.dtype)
    attns_ref[...] = attn[None].astype(attns_ref.dtype)

    # ---- carry state to next step ----
    h_scr[...] = h_new
    ctx_scr[...] = ctx


# ------------------------------- wrappers ------------------------------------
def attn_decoder_decode(params, tokens, last_context, last_hidden, encoder_outputs):
    """Fused T-step, B-stream AttnDecoderRNN decode ('dot' attention, 1 layer).

    tokens:           (T, B) int32 token ids (teacher-forced sequence)
    last_context:     (B, H)
    last_hidden:      (1, B, H)     (num_layers=1)
    encoder_outputs:  (S, B, H)     (PyTorch seq-major layout)
    returns per-step (outputs (T,B,V), contexts (T,B,H), hiddens (T,B,H), attn (T,B,S))
    """
    V, H = params["embedding"].shape
    T, B = tokens.shape
    S = encoder_outputs.shape[0]

    tokens = tokens.astype(jnp.int32)
    h0 = last_hidden.reshape(B, H).astype(jnp.float32)
    ctx0 = last_context.reshape(B, H).astype(jnp.float32)
    enc = jnp.transpose(encoder_outputs, (1, 0, 2)).astype(jnp.float32)   # (B, S, H)

    def resident(shape):
        nd = len(shape)
        return pl.BlockSpec(shape, lambda t, tok, _n=nd: (0,) * _n)

    grid_spec = pltpu.PrefetchScalarGridSpec(
        num_scalar_prefetch=1,
        grid=(T,),
        in_specs=[
            resident((V, H)),            # embedding table (resident)
            resident((B, H)),            # initial context
            resident((B, H)),            # initial hidden
            resident((B, S, H)),         # encoder outputs
            resident((2 * H, 3 * H)),    # W_i
            resident((H, 3 * H)),        # W_h
            resident((1, 3 * H)),        # b_i
            resident((1, 3 * H)),        # b_h
            resident((2 * H, V)),        # W_out
            resident((1, V)),            # b_out
        ],
        out_specs=(
            pl.BlockSpec((1, B, V), lambda t, tok: (t, 0, 0)),
            pl.BlockSpec((1, B, H), lambda t, tok: (t, 0, 0)),
            pl.BlockSpec((1, B, H), lambda t, tok: (t, 0, 0)),
            pl.BlockSpec((1, B, S), lambda t, tok: (t, 0, 0)),
        ),
        scratch_shapes=[
            pltpu.VMEM((B, 2 * H), jnp.float32),   # rnn input [emb | ctx]
            pltpu.VMEM((B, H), jnp.float32),       # carried hidden
            pltpu.VMEM((B, H), jnp.float32),       # carried context
        ],
    )

    outs, ctxs, hids, attns = pl.pallas_call(
        attn_decoder_kernel,
        out_shape=(
            jax.ShapeDtypeStruct((T, B, V), jnp.float32),
            jax.ShapeDtypeStruct((T, B, H), jnp.float32),
            jax.ShapeDtypeStruct((T, B, H), jnp.float32),
            jax.ShapeDtypeStruct((T, B, S), jnp.float32),
        ),
        grid_spec=grid_spec,
        compiler_params=pltpu.CompilerParams(
            dimension_semantics=("arbitrary",)),   # sequential: h/ctx carried in scratch
    )(
        tokens,
        params["embedding"], ctx0, h0, enc,
        params["W_i"], params["W_h"], params["b_i"], params["b_h"],
        params["W_out"], params["b_out"],
    )
    return outs, ctxs, hids, attns


def attn_decoder_step(params, word_input, last_context, last_hidden, encoder_outputs):
    """One AttnDecoderRNN.forward step (batch=1, num_layers=1, 'dot' attention).

    word_input:       int32 scalar (token id)
    last_context:     (1, H)
    last_hidden:      (1, 1, H)
    encoder_outputs:  (S, 1, H)
    returns (output (1,V), context (1,H), hidden (1,1,H), attn_weights (1,1,S))
    """
    H = params["embedding"].shape[1]
    S = encoder_outputs.shape[0]
    tokens = jnp.asarray(word_input, jnp.int32).reshape(1, 1)
    outs, ctxs, hids, attns = attn_decoder_decode(
        params, tokens, last_context, last_hidden, encoder_outputs)
    return outs[0], ctxs[0], hids[0].reshape(1, 1, H), attns[0].reshape(1, 1, S)


# ------------------------- deterministic parameters ---------------------------
def make_params(key, hidden_size, output_size):
    H, V = hidden_size, output_size
    ks = jax.random.split(key, 7)
    scale = 0.1

    def rnd(k, shape, dtype=jnp.float32):
        return (scale * jax.random.normal(k, shape, jnp.float32)).astype(dtype)

    return {
        # embedding kept f32: resident (one-time DMA) and f32 rows keep the
        # in-kernel dynamic row gather on the simple 32-bit path.
        "embedding": rnd(ks[0], (V, H)),
        # GRU (input size 2H, hidden size H); fused, stored (in,out), cols = [r|z|n]
        "W_i": rnd(ks[1], (2 * H, 3 * H), jnp.bfloat16),
        "W_h": rnd(ks[2], (H, 3 * H), jnp.bfloat16),
        "b_i": rnd(ks[3], (1, 3 * H)),
        "b_h": rnd(ks[4], (1, 3 * H)),
        # out: Linear(2H, V); rows = [h_new ; context]
        "W_out": rnd(ks[5], (2 * H, V), jnp.bfloat16),
        "b_out": rnd(ks[6], (1, V)),
    }


# --------------------------- pure-JAX reference -------------------------------
def reference_one_step(params, tok, ctx_prev, h_prev, enc):
    """tok (B,), ctx_prev (B,H), h_prev (B,H), enc (B,S,H)."""
    bf16 = jnp.bfloat16
    f32 = jnp.float32
    H = h_prev.shape[-1]
    emb = params["embedding"][tok]                                # (B, H)
    x = jnp.concatenate([emb, ctx_prev], axis=-1)
    gi = jnp.dot(x.astype(bf16), params["W_i"], preferred_element_type=f32) + params["b_i"]
    gh = jnp.dot(h_prev.astype(bf16), params["W_h"], preferred_element_type=f32) + params["b_h"]
    r = jax.nn.sigmoid(gi[:, :H] + gh[:, :H])
    z = jax.nn.sigmoid(gi[:, H:2 * H] + gh[:, H:2 * H])
    n = jnp.tanh(gi[:, 2 * H:] + r * gh[:, 2 * H:])
    h_new = (1.0 - z) * n + z * h_prev

    scores = jnp.sum(enc * h_new[:, None, :], axis=-1)            # (B, S)
    attn = jax.nn.softmax(scores, axis=-1)
    ctx = jnp.sum(attn[:, :, None] * enc, axis=1)                  # (B, H)

    hc = jnp.concatenate([h_new, ctx], axis=-1)
    logits = jnp.dot(hc.astype(bf16), params["W_out"], preferred_element_type=f32) + params["b_out"]
    out = jax.nn.log_softmax(logits, axis=-1)
    return out, ctx, h_new, attn


def reference_decode(params, tokens, last_context, last_hidden, encoder_outputs):
    T, B = tokens.shape
    H = params["embedding"].shape[1]
    enc = jnp.transpose(encoder_outputs, (1, 0, 2))
    h = last_hidden.reshape(B, H)
    ctx = last_context
    outs, ctxs, hids, attns = [], [], [], []
    for t in range(T):
        out, ctx, h, attn = reference_one_step(params, tokens[t], ctx, h, enc)
        outs.append(out); ctxs.append(ctx); hids.append(h); attns.append(attn)
    return jnp.stack(outs), jnp.stack(ctxs), jnp.stack(hids), jnp.stack(attns)


# ---------------------------------- main --------------------------------------
if __name__ == "__main__":
    hidden_size = 128    # H (lane-dense: 3H=384 and V are multiples of 128)
    output_size = 256    # V (vocab size)
    seq_len = 8          # S (number of encoder outputs, <= max_length)
    num_steps = 6        # T decode steps fused in one pallas_call
    batch = 8            # B independent decode streams (batched LHS)

    key = jax.random.PRNGKey(0)
    k_params, k_tok, k_ctx, k_hid, k_enc = jax.random.split(key, 5)

    params = make_params(k_params, hidden_size, output_size)

    tokens = jax.random.randint(k_tok, (num_steps, batch), 0, output_size, dtype=jnp.int32)
    last_context = 0.1 * jax.random.normal(k_ctx, (batch, hidden_size), jnp.float32)
    last_hidden = 0.1 * jax.random.normal(k_hid, (1, batch, hidden_size), jnp.float32)
    encoder_outputs = 0.1 * jax.random.normal(
        k_enc, (seq_len, batch, hidden_size), jnp.float32)

    decode = jax.jit(attn_decoder_decode)
    outs, ctxs, hids, attns = decode(
        params, tokens, last_context, last_hidden, encoder_outputs)
    jax.block_until_ready((outs, ctxs, hids, attns))

    # ---- multi-step batched decode vs pure-JAX reference ----
    r_outs, r_ctxs, r_hids, r_attns = reference_decode(
        params, tokens, last_context, last_hidden, encoder_outputs)
    np.testing.assert_allclose(np.asarray(outs), np.asarray(r_outs), rtol=2e-3, atol=2e-3)
    np.testing.assert_allclose(np.asarray(ctxs), np.asarray(r_ctxs), rtol=2e-3, atol=2e-3)
    np.testing.assert_allclose(np.asarray(hids), np.asarray(r_hids), rtol=2e-3, atol=2e-3)
    np.testing.assert_allclose(np.asarray(attns), np.asarray(r_attns), rtol=2e-3, atol=2e-3)

    assert outs.shape == (num_steps, batch, output_size)
    assert ctxs.shape == (num_steps, batch, hidden_size)
    assert hids.shape == (num_steps, batch, hidden_size)
    assert attns.shape == (num_steps, batch, seq_len)
    # rows must exponentiate / sum to probability distributions
    np.testing.assert_allclose(np.exp(np.asarray(outs)).sum(-1), 1.0, rtol=2e-3, atol=2e-3)
    np.testing.assert_allclose(np.asarray(attns).sum(-1), 1.0, rtol=2e-3, atol=2e-3)

    # ---- single forward() step (batch=1), matching the PyTorch module signature ----
    word_input = jnp.array(3, dtype=jnp.int32)
    out1, ctx1, hid1, attn1 = attn_decoder_step(
        params, word_input, last_context[:1], last_hidden[:, :1], encoder_outputs[:, :1])
    jax.block_until_ready((out1, ctx1, hid1, attn1))
    r1 = reference_decode(params, jnp.array([[3]], jnp.int32),
                          last_context[:1], last_hidden[:, :1], encoder_outputs[:, :1])
    np.testing.assert_allclose(np.asarray(out1), np.asarray(r1[0][0]), rtol=2e-3, atol=2e-3)
    np.testing.assert_allclose(np.asarray(ctx1), np.asarray(r1[1][0]), rtol=2e-3, atol=2e-3)
    np.testing.assert_allclose(np.asarray(hid1).reshape(1, -1), np.asarray(r1[2][0]),
                               rtol=2e-3, atol=2e-3)
    np.testing.assert_allclose(np.asarray(attn1).reshape(1, -1), np.asarray(r1[3][0]),
                               rtol=2e-3, atol=2e-3)
    assert out1.shape == (1, output_size)
    assert ctx1.shape == (1, hidden_size)
    assert hid1.shape == (1, 1, hidden_size)
    assert attn1.shape == (1, 1, seq_len)

    print("KERNEL_OK")
</pallas_src>

<mosaic_0001>
module attributes {stable_mosaic.version = 11 : i64} {
  func.func @attn_decoder_kernel(%arg0: i32, %arg1: memref<6x8xi32, #tpu.memory_space<smem>>, %arg2: memref<256x128xf32, #tpu.memory_space<vmem>>, %arg3: memref<8x128xf32, #tpu.memory_space<vmem>>, %arg4: memref<8x128xf32, #tpu.memory_space<vmem>>, %arg5: memref<8x8x128xf32, #tpu.memory_space<vmem>>, %arg6: memref<256x384xbf16, #tpu.memory_space<vmem>>, %arg7: memref<128x384xbf16, #tpu.memory_space<vmem>>, %arg8: memref<1x384xf32, #tpu.memory_space<vmem>>, %arg9: memref<1x384xf32, #tpu.memory_space<vmem>>, %arg10: memref<256x256xbf16, #tpu.memory_space<vmem>>, %arg11: memref<1x256xf32, #tpu.memory_space<vmem>>, %arg12: memref<1x8x256xf32, #tpu.memory_space<vmem>>, %arg13: memref<1x8x128xf32, #tpu.memory_space<vmem>>, %arg14: memref<1x8x128xf32, #tpu.memory_space<vmem>>, %arg15: memref<1x8x8xf32, #tpu.memory_space<vmem>>, %arg16: memref<8x256xf32, #tpu.memory_space<vmem>>, %arg17: memref<8x128xf32, #tpu.memory_space<vmem>>, %arg18: memref<8x128xf32, #tpu.memory_space<vmem>>) attributes {dimension_semantics = [#tpu.dimension_semantics<arbitrary>], iteration_bounds = array<i64: 6>, scalar_prefetch = 1 : i64, scratch_operands = 3 : i64, tpu.core_type = #tpu.core_type<tc>, window_params = [{pipeline_mode = #tpu.pipeline_mode<synchronous>, transform_indices = @transform_0, window_bounds = array<i64: 256, 128>}, {pipeline_mode = #tpu.pipeline_mode<synchronous>, transform_indices = @transform_1, window_bounds = array<i64: 8, 128>}, {pipeline_mode = #tpu.pipeline_mode<synchronous>, transform_indices = @transform_2, window_bounds = array<i64: 8, 128>}, {pipeline_mode = #tpu.pipeline_mode<synchronous>, transform_indices = @transform_3, window_bounds = array<i64: 8, 8, 128>}, {pipeline_mode = #tpu.pipeline_mode<synchronous>, transform_indices = @transform_4, window_bounds = array<i64: 256, 384>}, {pipeline_mode = #tpu.pipeline_mode<synchronous>, transform_indices = @transform_5, window_bounds = array<i64: 128, 384>}, {pipeline_mode = #tpu.pipeline_mode<synchronous>, transform_indices = @transform_6, window_bounds = array<i64: 1, 384>}, {pipeline_mode = #tpu.pipeline_mode<synchronous>, transform_indices = @transform_7, window_bounds = array<i64: 1, 384>}, {pipeline_mode = #tpu.pipeline_mode<synchronous>, transform_indices = @transform_8, window_bounds = array<i64: 256, 256>}, {pipeline_mode = #tpu.pipeline_mode<synchronous>, transform_indices = @transform_9, window_bounds = array<i64: 1, 256>}, {transform_indices = @transform_10, window_bounds = array<i64: 1, 8, 256>}, {transform_indices = @transform_11, window_bounds = array<i64: 1, 8, 128>}, {transform_indices = @transform_12, window_bounds = array<i64: 1, 8, 128>}, {transform_indices = @transform_13, window_bounds = array<i64: 1, 8, 8>}]} {
    %c0_i32 = arith.constant 0 : i32
    %0 = arith.cmpi eq, %arg0, %c0_i32 : i32
    %1 = arith.extui %0 : i1 to i32
    %c0_i32_0 = arith.constant 0 : i32
    %2 = arith.cmpi ne, %1, %c0_i32_0 : i32
    scf.if %2 {
      %c0_74 = arith.constant 0 : index
      %c0_75 = arith.constant 0 : index
      %132 = vector.load %arg4[%c0_74, %c0_75] : memref<8x128xf32, #tpu.memory_space<vmem>>, vector<8x128xf32>
      %c0_76 = arith.constant 0 : index
      %c0_77 = arith.constant 0 : index
      %133 = vector.load %arg17[%c0_76, %c0_77] : memref<8x128xf32, #tpu.memory_space<vmem>>, vector<8x128xf32>
      tpu.vector_store %arg17[%c0_76, %c0_77], %132 {strides = array<i32>} : memref<8x128xf32, #tpu.memory_space<vmem>>, vector<8x128xf32>,
      %c0_78 = arith.constant 0 : index
      %c0_79 = arith.constant 0 : index
      %134 = vector.load %arg3[%c0_78, %c0_79] : memref<8x128xf32, #tpu.memory_space<vmem>>, vector<8x128xf32>
      %c0_80 = arith.constant 0 : index
      %c0_81 = arith.constant 0 : index
      %135 = vector.load %arg18[%c0_80, %c0_81] : memref<8x128xf32, #tpu.memory_space<vmem>>, vector<8x128xf32>
      tpu.vector_store %arg18[%c0_80, %c0_81], %134 {strides = array<i32>} : memref<8x128xf32, #tpu.memory_space<vmem>>, vector<8x128xf32>,
    } else {
    }
    %3 = arith.index_cast %arg0 : i32 to index
    %c0 = arith.constant 0 : index
    %4 = memref.load %arg1[%3, %c0] : memref<6x8xi32, #tpu.memory_space<smem>>
    %5 = arith.index_cast %4 : i32 to index
    %c0_1 = arith.constant 0 : index
    %6 = vector.load %arg2[%5, %c0_1] : memref<256x128xf32, #tpu.memory_space<vmem>>, vector<1x128xf32>
    %c0_2 = arith.constant 0 : index
    %c0_3 = arith.constant 0 : index
    %7 = vector.load %arg16[%c0_2, %c0_3] : memref<8x256xf32, #tpu.memory_space<vmem>>, vector<1x128xf32>
    tpu.vector_store %arg16[%c0_2, %c0_3], %6 {strides = array<i32>} : memref<8x256xf32, #tpu.memory_space<vmem>>, vector<1x128xf32>,
    %8 = arith.index_cast %arg0 : i32 to index
    %c1 = arith.constant 1 : index
    %9 = memref.load %arg1[%8, %c1] : memref<6x8xi32, #tpu.memory_space<smem>>
    %10 = arith.index_cast %9 : i32 to index
    %c0_4 = arith.constant 0 : index
    %11 = vector.load %arg2[%10, %c0_4] : memref<256x128xf32, #tpu.memory_space<vmem>>, vector<1x128xf32>
    %c1_5 = arith.constant 1 : index
    %c0_6 = arith.constant 0 : index
    %12 = vector.load %arg16[%c1_5, %c0_6] : memref<8x256xf32, #tpu.memory_space<vmem>>, vector<1x128xf32>
    tpu.vector_store %arg16[%c1_5, %c0_6], %11 {strides = array<i32>} : memref<8x256xf32, #tpu.memory_space<vmem>>, vector<1x128xf32>,
    %13 = arith.index_cast %arg0 : i32 to index
    %c2 = arith.constant 2 : index
    %14 = memref.load %arg1[%13, %c2] : memref<6x8xi32, #tpu.memory_space<smem>>
    %15 = arith.index_cast %14 : i32 to index
    %c0_7 = arith.constant 0 : index
    %16 = vector.load %arg2[%15, %c0_7] : memref<256x128xf32, #tpu.memory_space<vmem>>, vector<1x128xf32>
    %c2_8 = arith.constant 2 : index
    %c0_9 = arith.constant 0 : index
    %17 = vector.load %arg16[%c2_8, %c0_9] : memref<8x256xf32, #tpu.memory_space<vmem>>, vector<1x128xf32>
    tpu.vector_store %arg16[%c2_8, %c0_9], %16 {strides = array<i32>} : memref<8x256xf32, #tpu.memory_space<vmem>>, vector<1x128xf32>,
    %18 = arith.index_cast %arg0 : i32 to index
    %c3 = arith.constant 3 : index
    %19 = memref.load %arg1[%18, %c3] : memref<6x8xi32, #tpu.memory_space<smem>>
    %20 = arith.index_cast %19 : i32 to index
    %c0_10 = arith.constant 0 : index
    %21 = vector.load %arg2[%20, %c0_10] : memref<256x128xf32, #tpu.memory_space<vmem>>, vector<1x128xf32>
    %c3_11 = arith.constant 3 : index
    %c0_12 = arith.constant 0 : index
    %22 = vector.load %arg16[%c3_11, %c0_12] : memref<8x256xf32, #tpu.memory_space<vmem>>, vector<1x128xf32>
    tpu.vector_store %arg16[%c3_11, %c0_12], %21 {strides = array<i32>} : memref<8x256xf32, #tpu.memory_space<vmem>>, vector<1x128xf32>,
    %23 = arith.index_cast %arg0 : i32 to index
    %c4 = arith.constant 4 : index
    %24 = memref.load %arg1[%23, %c4] : memref<6x8xi32, #tpu.memory_space<smem>>
    %25 = arith.index_cast %24 : i32 to index
    %c0_13 = arith.constant 0 : index
    %26 = vector.load %arg2[%25, %c0_13] : memref<256x128xf32, #tpu.memory_space<vmem>>, vector<1x128xf32>
    %c4_14 = arith.constant 4 : index
    %c0_15 = arith.constant 0 : index
    %27 = vector.load %arg16[%c4_14, %c0_15] : memref<8x256xf32, #tpu.memory_space<vmem>>, vector<1x128xf32>
    tpu.vector_store %arg16[%c4_14, %c0_15], %26 {strides = array<i32>} : memref<8x256xf32, #tpu.memory_space<vmem>>, vector<1x128xf32>,
    %28 = arith.index_cast %arg0 : i32 to index
    %c5 = arith.constant 5 : index
    %29 = memref.load %arg1[%28, %c5] : memref<6x8xi32, #tpu.memory_space<smem>>
    %30 = arith.index_cast %29 : i32 to index
    %c0_16 = arith.constant 0 : index
    %31 = vector.load %arg2[%30, %c0_16] : memref<256x128xf32, #tpu.memory_space<vmem>>, vector<1x128xf32>
    %c5_17 = arith.constant 5 : index
    %c0_18 = arith.constant 0 : index
    %32 = vector.load %arg16[%c5_17, %c0_18] : memref<8x256xf32, #tpu.memory_space<vmem>>, vector<1x128xf32>
    tpu.vector_store %arg16[%c5_17, %c0_18], %31 {strides = array<i32>} : memref<8x256xf32, #tpu.memory_space<vmem>>, vector<1x128xf32>,
    %33 = arith.index_cast %arg0 : i32 to index
    %c6 = arith.constant 6 : index
    %34 = memref.load %arg1[%33, %c6] : memref<6x8xi32, #tpu.memory_space<smem>>
    %35 = arith.index_cast %34 : i32 to index
    %c0_19 = arith.constant 0 : index
    %36 = vector.load %arg2[%35, %c0_19] : memref<256x128xf32, #tpu.memory_space<vmem>>, vector<1x128xf32>
    %c6_20 = arith.constant 6 : index
    %c0_21 = arith.constant 0 : index
    %37 = vector.load %arg16[%c6_20, %c0_21] : memref<8x256xf32, #tpu.memory_space<vmem>>, vector<1x128xf32>
    tpu.vector_store %arg16[%c6_20, %c0_21], %36 {strides = array<i32>} : memref<8x256xf32, #tpu.memory_space<vmem>>, vector<1x128xf32>,
    %38 = arith.index_cast %arg0 : i32 to index
    %c7 = arith.constant 7 : index
    %39 = memref.load %arg1[%38, %c7] : memref<6x8xi32, #tpu.memory_space<smem>>
    %40 = arith.index_cast %39 : i32 to index
    %c0_22 = arith.constant 0 : index
    %41 = vector.load %arg2[%40, %c0_22] : memref<256x128xf32, #tpu.memory_space<vmem>>, vector<1x128xf32>
    %c7_23 = arith.constant 7 : index
    %c0_24 = arith.constant 0 : index
    %42 = vector.load %arg16[%c7_23, %c0_24] : memref<8x256xf32, #tpu.memory_space<vmem>>, vector<1x128xf32>
    tpu.vector_store %arg16[%c7_23, %c0_24], %41 {strides = array<i32>} : memref<8x256xf32, #tpu.memory_space<vmem>>, vector<1x128xf32>,
    %c0_25 = arith.constant 0 : index
    %c0_26 = arith.constant 0 : index
    %43 = vector.load %arg18[%c0_25, %c0_26] : memref<8x128xf32, #tpu.memory_space<vmem>>, vector<8x128xf32>
    %c0_27 = arith.constant 0 : index
    %c128 = arith.constant 128 : index
    %44 = vector.load %arg16[%c0_27, %c128] : memref<8x256xf32, #tpu.memory_space<vmem>>, vector<8x128xf32>
    tpu.vector_store %arg16[%c0_27, %c128], %43 {strides = array<i32>} : memref<8x256xf32, #tpu.memory_space<vmem>>, vector<8x128xf32>,
    %c0_28 = arith.constant 0 : index
    %c0_29 = arith.constant 0 : index
    %45 = vector.load %arg17[%c0_28, %c0_29] : memref<8x128xf32, #tpu.memory_space<vmem>>, vector<8x128xf32>
    %c0_30 = arith.constant 0 : index
    %c0_31 = arith.constant 0 : index
    %46 = vector.load %arg16[%c0_30, %c0_31] : memref<8x256xf32, #tpu.memory_space<vmem>>, vector<8x256xf32>
    %47 = arith.truncf %46 : vector<8x256xf32> to vector<8x256xbf16>
    %c0_32 = arith.constant 0 : index
    %c0_33 = arith.constant 0 : index
    %48 = vector.load %arg6[%c0_32, %c0_33] : memref<256x384xbf16, #tpu.memory_space<vmem>>, vector<256x384xbf16>
    %cst = arith.constant dense<0.000000e+00> : vector<8x384xf32>
    %49 = tpu.matmul %47, %48, %cst {dimension_numbers = #tpu.dot_dimension_numbers<[1], [0], [0], [1], [0, 0, 1, 1], [], []>} : vector<8x256xbf16>, vector<256x384xbf16>, vector<8x384xf32> -> vector<8x384xf32>
    %c0_34 = arith.constant 0 : index
    %c0_35 = arith.constant 0 : index
    %50 = vector.load %arg8[%c0_34, %c0_35] : memref<1x384xf32, #tpu.memory_space<vmem>>, vector<1x384xf32>
    %51 = vector.broadcast %50 : vector<1x384xf32> to vector<8x384xf32>
    %52 = arith.addf %49, %51 : vector<8x384xf32>
    %53 = arith.truncf %45 : vector<8x128xf32> to vector<8x128xbf16>
    %c0_36 = arith.constant 0 : index
    %c0_37 = arith.constant 0 : index
    %54 = vector.load %arg7[%c0_36, %c0_37] : memref<128x384xbf16, #tpu.memory_space<vmem>>, vector<128x384xbf16>
    %cst_38 = arith.constant dense<0.000000e+00> : vector<8x384xf32>
    %55 = tpu.matmul %53, %54, %cst_38 {dimension_numbers = #tpu.dot_dimension_numbers<[1], [0], [0], [1], [0, 0, 1, 1], [], []>} : vector<8x128xbf16>, vector<128x384xbf16>, vector<8x384xf32> -> vector<8x384xf32>
    %c0_39 = arith.constant 0 : index
    %c0_40 = arith.constant 0 : index
    %56 = vector.load %arg9[%c0_39, %c0_40] : memref<1x384xf32, #tpu.memory_space<vmem>>, vector<1x384xf32>
    %57 = vector.broadcast %56 : vector<1x384xf32> to vector<8x384xf32>
    %58 = arith.addf %55, %57 : vector<8x384xf32>
    %59 = vector.extract_strided_slice %52 {offsets = [0, 0], sizes = [8, 128], strides = [1, 1]} : vector<8x384xf32> to vector<8x128xf32>
    %60 = vector.extract_strided_slice %58 {offsets = [0, 0], sizes = [8, 128], strides = [1, 1]} : vector<8x384xf32> to vector<8x128xf32>
    %61 = arith.addf %59, %60 : vector<8x128xf32>
    %62 = arith.negf %61 : vector<8x128xf32>
    %63 = math.exp %62 : vector<8x128xf32>
    %cst_41 = arith.constant 1.000000e+00 : f32
    %64 = vector.broadcast %cst_41 : f32 to vector<8x128xf32>
    %65 = arith.addf %64, %63 : vector<8x128xf32>
    %66 = arith.divf %64, %65 : vector<8x128xf32>
    %67 = vector.extract_strided_slice %52 {offsets = [0, 128], sizes = [8, 128], strides = [1, 1]} : vector<8x384xf32> to vector<8x128xf32>
    %68 = vector.extract_strided_slice %58 {offsets = [0, 128], sizes = [8, 128], strides = [1, 1]} : vector<8x384xf32> to vector<8x128xf32>
    %69 = arith.addf %67, %68 : vector<8x128xf32>
    %70 = arith.negf %69 : vector<8x128xf32>
    %71 = math.exp %70 : vector<8x128xf32>
    %cst_42 = arith.constant 1.000000e+00 : f32
    %72 = vector.broadcast %cst_42 : f32 to vector<8x128xf32>
    %73 = arith.addf %72, %71 : vector<8x128xf32>
    %74 = arith.divf %72, %73 : vector<8x128xf32>
    %75 = vector.extract_strided_slice %52 {offsets = [0, 256], sizes = [8, 128], strides = [1, 1]} : vector<8x384xf32> to vector<8x128xf32>
    %76 = vector.extract_strided_slice %58 {offsets = [0, 256], sizes = [8, 128], strides = [1, 1]} : vector<8x384xf32> to vector<8x128xf32>
    %77 = arith.mulf %66, %76 : vector<8x128xf32>
    %78 = arith.addf %75, %77 : vector<8x128xf32>
    %79 = math.tanh %78 : vector<8x128xf32>
    %cst_43 = arith.constant 1.000000e+00 : f32
    %80 = vector.broadcast %cst_43 : f32 to vector<8x128xf32>
    %81 = arith.subf %80, %74 : vector<8x128xf32>
    %82 = arith.mulf %81, %79 : vector<8x128xf32>
    %83 = arith.mulf %74, %45 : vector<8x128xf32>
    %84 = arith.addf %82, %83 : vector<8x128xf32>
    %c0_44 = arith.constant 0 : index
    %c0_45 = arith.constant 0 : index
    %c0_46 = arith.constant 0 : index
    %85 = vector.load %arg5[%c0_44, %c0_45, %c0_46] : memref<8x8x128xf32, #tpu.memory_space<vmem>>, vector<8x8x128xf32>
    %86 = vector.shape_cast %84 : vector<8x128xf32> to vector<8x1x128xf32>
    %87 = vector.broadcast %86 : vector<8x1x128xf32> to vector<8x8x128xf32>
    %88 = arith.mulf %85, %87 : vector<8x8x128xf32>
    %cst_47 = arith.constant dense<0.000000e+00> : vector<8x8xf32>
    %89 = vector.multi_reduction <add>, %88, %cst_47 [2] : vector<8x8x128xf32> to vector<8x8xf32>
    %cst_48 = arith.constant dense<0xFF800000> : vector<8xf32>
    %90 = vector.multi_reduction <maximumf>, %89, %cst_48 [1] : vector<8x8xf32> to vector<8xf32>
    %91 = vector.shape_cast %90 : vector<8xf32> to vector<8x1xf32>
    %92 = vector.broadcast %91 : vector<8x1xf32> to vector<8x8xf32>
    %93 = arith.subf %89, %92 : vector<8x8xf32>
    %94 = math.exp %93 : vector<8x8xf32>
    %cst_49 = arith.constant dense<0.000000e+00> : vector<8xf32>
    %95 = vector.multi_reduction <add>, %94, %cst_49 [1] : vector<8x8xf32> to vector<8xf32>
    %96 = vector.shape_cast %95 : vector<8xf32> to vector<8x1xf32>
    %97 = tpu.reciprocal %96 {approx = true} : vector<8x1xf32> -> vector<8x1xf32>
    %98 = vector.broadcast %97 : vector<8x1xf32> to vector<8x8xf32>
    %99 = arith.mulf %94, %98 : vector<8x8xf32>
    %100 = vector.shape_cast %99 : vector<8x8xf32> to vector<8x8x1xf32>
    %101 = vector.broadcast %100 : vector<8x8x1xf32> to vector<8x8x128xf32>
    %102 = arith.mulf %101, %85 : vector<8x8x128xf32>
    %cst_50 = arith.constant dense<0.000000e+00> : vector<8x128xf32>
    %103 = vector.multi_reduction <add>, %102, %cst_50 [1] : vector<8x8x128xf32> to vector<8x128xf32>
    %104 = tpu.concatenate %84, %103 in 1 : vector<8x128xf32>, vector<8x128xf32> -> vector<8x256xf32>
    %105 = arith.truncf %104 : vector<8x256xf32> to vector<8x256xbf16>
    %c0_51 = arith.constant 0 : index
    %c0_52 = arith.constant 0 : index
    %106 = vector.load %arg10[%c0_51, %c0_52] : memref<256x256xbf16, #tpu.memory_space<vmem>>, vector<256x256xbf16>
    %cst_53 = arith.constant dense<0.000000e+00> : vector<8x256xf32>
    %107 = tpu.matmul %105, %106, %cst_53 {dimension_numbers = #tpu.dot_dimension_numbers<[1], [0], [0], [1], [0, 0, 1, 1], [], []>} : vector<8x256xbf16>, vector<256x256xbf16>, vector<8x256xf32> -> vector<8x256xf32>
    %c0_54 = arith.constant 0 : index
    %c0_55 = arith.constant 0 : index
    %108 = vector.load %arg11[%c0_54, %c0_55] : memref<1x256xf32, #tpu.memory_space<vmem>>, vector<1x256xf32>
    %109 = vector.broadcast %108 : vector<1x256xf32> to vector<8x256xf32>
    %110 = arith.addf %107, %109 : vector<8x256xf32>
    %cst_56 = arith.constant dense<0xFF800000> : vector<8xf32>
    %111 = vector.multi_reduction <maximumf>, %110, %cst_56 [1] : vector<8x256xf32> to vector<8xf32>
    %112 = vector.shape_cast %111 : vector<8xf32> to vector<8x1xf32>
    %113 = vector.broadcast %112 : vector<8x1xf32> to vector<8x256xf32>
    %114 = arith.subf %110, %113 : vector<8x256xf32>
    %115 = math.exp %114 : vector<8x256xf32>
    %cst_57 = arith.constant dense<0.000000e+00> : vector<8xf32>
    %116 = vector.multi_reduction <add>, %115, %cst_57 [1] : vector<8x256xf32> to vector<8xf32>
    %117 = vector.shape_cast %116 : vector<8xf32> to vector<8x1xf32>
    %118 = math.log %117 : vector<8x1xf32>
    %119 = arith.addf %112, %118 : vector<8x1xf32>
    %120 = vector.broadcast %119 : vector<8x1xf32> to vector<8x256xf32>
    %121 = arith.subf %110, %120 : vector<8x256xf32>
    %122 = vector.shape_cast %121 : vector<8x256xf32> to vector<1x8x256xf32>
    %c0_58 = arith.constant 0 : index
    %c0_59 = arith.constant 0 : index
    %c0_60 = arith.constant 0 : index
    %123 = vector.load %arg12[%c0_58, %c0_59, %c0_60] : memref<1x8x256xf32, #tpu.memory_space<vmem>>, vector<1x8x256xf32>
    tpu.vector_store %arg12[%c0_58, %c0_59, %c0_60], %122 {strides = array<i32>} : memref<1x8x256xf32, #tpu.memory_space<vmem>>, vector<1x8x256xf32>,
    %124 = vector.shape_cast %103 : vector<8x128xf32> to vector<1x8x128xf32>
    %c0_61 = arith.constant 0 : index
    %c0_62 = arith.constant 0 : index
    %c0_63 = arith.constant 0 : index
    %125 = vector.load %arg13[%c0_61, %c0_62, %c0_63] : memref<1x8x128xf32, #tpu.memory_space<vmem>>, vector<1x8x128xf32>
    tpu.vector_store %arg13[%c0_61, %c0_62, %c0_63], %124 {strides = array<i32>} : memref<1x8x128xf32, #tpu.memory_space<vmem>>, vector<1x8x128xf32>,
    %126 = vector.shape_cast %84 : vector<8x128xf32> to vector<1x8x128xf32>
    %c0_64 = arith.constant 0 : index
    %c0_65 = arith.constant 0 : index
    %c0_66 = arith.constant 0 : index
    %127 = vector.load %arg14[%c0_64, %c0_65, %c0_66] : memref<1x8x128xf32, #tpu.memory_space<vmem>>, vector<1x8x128xf32>
    tpu.vector_store %arg14[%c0_64, %c0_65, %c0_66], %126 {strides = array<i32>} : memref<1x8x128xf32, #tpu.memory_space<vmem>>, vector<1x8x128xf32>,
    %128 = vector.shape_cast %99 : vector<8x8xf32> to vector<1x8x8xf32>
    %c0_67 = arith.constant 0 : index
    %c0_68 = arith.constant 0 : index
    %c0_69 = arith.constant 0 : index
    %129 = vector.load %arg15[%c0_67, %c0_68, %c0_69] : memref<1x8x8xf32, #tpu.memory_space<vmem>>, vector<1x8x8xf32>
    tpu.vector_store %arg15[%c0_67, %c0_68, %c0_69], %128 {strides = array<i32>} : memref<1x8x8xf32, #tpu.memory_space<vmem>>, vector<1x8x8xf32>,
    %c0_70 = arith.constant 0 : index
    %c0_71 = arith.constant 0 : index
    %130 = vector.load %arg17[%c0_70, %c0_71] : memref<8x128xf32, #tpu.memory_space<vmem>>, vector<8x128xf32>
    tpu.vector_store %arg17[%c0_70, %c0_71], %84 {strides = array<i32>} : memref<8x128xf32, #tpu.memory_space<vmem>>, vector<8x128xf32>,
    %c0_72 = arith.constant 0 : index
    %c0_73 = arith.constant 0 : index
    %131 = vector.load %arg18[%c0_72, %c0_73] : memref<8x128xf32, #tpu.memory_space<vmem>>, vector<8x128xf32>
    tpu.vector_store %arg18[%c0_72, %c0_73], %103 {strides = array<i32>} : memref<8x128xf32, #tpu.memory_space<vmem>>, vector<8x128xf32>,
    return
  }
  func.func @transform_0(%arg0: i32, %arg1: memref<6x8xi32, #tpu.memory_space<smem>>) -> (i32, i32) {
    %c0_i32 = arith.constant 0 : i32
    %c0_i32_0 = arith.constant 0 : i32
    %c0_i32_1 = arith.constant 0 : i32
    return %c0_i32, %c0_i32_0 : i32, i32
  }
  func.func @transform_1(%arg0: i32, %arg1: memref<6x8xi32, #tpu.memory_space<smem>>) -> (i32, i32) {
    %c0_i32 = arith.constant 0 : i32
    %c0_i32_0 = arith.constant 0 : i32
    %c0_i32_1 = arith.constant 0 : i32
    return %c0_i32, %c0_i32_0 : i32, i32
  }
  func.func @transform_2(%arg0: i32, %arg1: memref<6x8xi32, #tpu.memory_space<smem>>) -> (i32, i32) {
    %c0_i32 = arith.constant 0 : i32
    %c0_i32_0 = arith.constant 0 : i32
    %c0_i32_1 = arith.constant 0 : i32
    return %c0_i32, %c0_i32_0 : i32, i32
  }
  func.func @transform_3(%arg0: i32, %arg1: memref<6x8xi32, #tpu.memory_space<smem>>) -> (i32, i32, i32) {
    %c0_i32 = arith.constant 0 : i32
    %c0_i32_0 = arith.constant 0 : i32
    %c0_i32_1 = arith.constant 0 : i32
    %c0_i32_2 = arith.constant 0 : i32
    return %c0_i32, %c0_i32_0, %c0_i32_1 : i32, i32, i32
  }
  func.func @transform_4(%arg0: i32, %arg1: memref<6x8xi32, #tpu.memory_space<smem>>) -> (i32, i32) {
    %c0_i32 = arith.constant 0 : i32
    %c0_i32_0 = arith.constant 0 : i32
    %c0_i32_1 = arith.constant 0 : i32
    return %c0_i32, %c0_i32_0 : i32, i32
  }
  func.func @transform_5(%arg0: i32, %arg1: memref<6x8xi32, #tpu.memory_space<smem>>) -> (i32, i32) {
    %c0_i32 = arith.constant 0 : i32
    %c0_i32_0 = arith.constant 0 : i32
    %c0_i32_1 = arith.constant 0 : i32
    return %c0_i32, %c0_i32_0 : i32, i32
  }
  func.func @transform_6(%arg0: i32, %arg1: memref<6x8xi32, #tpu.memory_space<smem>>) -> (i32, i32) {
    %c0_i32 = arith.constant 0 : i32
    %c0_i32_0 = arith.constant 0 : i32
    %c0_i32_1 = arith.constant 0 : i32
    return %c0_i32, %c0_i32_0 : i32, i32
  }
  func.func @transform_7(%arg0: i32, %arg1: memref<6x8xi32, #tpu.memory_space<smem>>) -> (i32, i32) {
    %c0_i32 = arith.constant 0 : i32
    %c0_i32_0 = arith.constant 0 : i32
    %c0_i32_1 = arith.constant 0 : i32
    return %c0_i32, %c0_i32_0 : i32, i32
  }
  func.func @transform_8(%arg0: i32, %arg1: memref<6x8xi32, #tpu.memory_space<smem>>) -> (i32, i32) {
    %c0_i32 = arith.constant 0 : i32
    %c0_i32_0 = arith.constant 0 : i32
    %c0_i32_1 = arith.constant 0 : i32
    return %c0_i32, %c0_i32_0 : i32, i32
  }
  func.func @transform_9(%arg0: i32, %arg1: memref<6x8xi32, #tpu.memory_space<smem>>) -> (i32, i32) {
    %c0_i32 = arith.constant 0 : i32
    %c0_i32_0 = arith.constant 0 : i32
    %c0_i32_1 = arith.constant 0 : i32
    return %c0_i32, %c0_i32_0 : i32, i32
  }
  func.func @transform_10(%arg0: i32, %arg1: memref<6x8xi32, #tpu.memory_space<smem>>) -> (i32, i32, i32) {
    %c0_i32 = arith.constant 0 : i32
    %c0_i32_0 = arith.constant 0 : i32
    %c0_i32_1 = arith.constant 0 : i32
    return %arg0, %c0_i32, %c0_i32_0 : i32, i32, i32
  }
  func.func @transform_11(%arg0: i32, %arg1: memref<6x8xi32, #tpu.memory_space<smem>>) -> (i32, i32, i32) {
    %c0_i32 = arith.constant 0 : i32
    %c0_i32_0 = arith.constant 0 : i32
    %c0_i32_1 = arith.constant 0 : i32
    return %arg0, %c0_i32, %c0_i32_0 : i32, i32, i32
  }
  func.func @transform_12(%arg0: i32, %arg1: memref<6x8xi32, #tpu.memory_space<smem>>) -> (i32, i32, i32) {
    %c0_i32 = arith.constant 0 : i32
    %c0_i32_0 = arith.constant 0 : i32
    %c0_i32_1 = arith.constant 0 : i32
    return %arg0, %c0_i32, %c0_i32_0 : i32, i32, i32
  }
  func.func @transform_13(%arg0: i32, %arg1: memref<6x8xi32, #tpu.memory_space<smem>>) -> (i32, i32, i32) {
    %c0_i32 = arith.constant 0 : i32
    %c0_i32_0 = arith.constant 0 : i32
    %c0_i32_1 = arith.constant 0 : i32
    return %arg0, %c0_i32, %c0_i32_0 : i32, i32, i32
  }
}

</mosaic_0001>

<bundles_post_ra>
// kernel: attn_decoder_decode.1
= control target key start
LH: loop header
LB: loop body
LE: loop exit
PB: predicated region body
PF: predicated region fallthrough
CT: control target
= control target key end

     0   :  { %s3812_s0 = inlined_call_operand.vmem [shape: s32[6,8], index: 0, kind: input, shape index: {}]   ;;  %s3813_s1 = inlined_call_operand.hbm [shape: f32[256,128], index: 1, kind: input, shape index: {}]   ;;  %s3814_s2 = inlined_call_operand.vmem [shape: f32[8,128], index: 2, kind: input, shape index: {}]   ;;  %s3815_s3 = inlined_call_operand.vmem [shape: f32[8,128], index: 3, kind: input, shape index: {}]   ;;  %s3816_s4 = inlined_call_operand.vmem [shape: f32[8,8,128], index: 4, kind: input, shape index: {}]   ;;  %s3817_s5 = inlined_call_operand.hbm [shape: bf16[256,384], index: 5, kind: input, shape index: {}]   ;;  %s3818_s6 = inlined_call_operand.hbm [shape: bf16[128,384], index: 6, kind: input, shape index: {}]   ;;  %s3819_s7 = inlined_call_operand.vmem [shape: f32[1,384], index: 7, kind: input, shape index: {}]   ;;  %s3820_s8 = inlined_call_operand.vmem [shape: f32[1,384], index: 8, kind: input, shape index: {}]   ;;  %s3821_s9 = inlined_call_operand.hbm [shape: bf16[256,256], index: 9, kind: input, shape index: {}]   ;;  %s3822_s10 = inlined_call_operand.vmem [shape: f32[1,256], index: 10, kind: input, shape index: {}]   ;;  %s3823_s11 = inlined_call_operand.hbm [shape: f32[6,8,256], index: 11, kind: output, shape index: {0}]   ;;  %s3824_s12 = inlined_call_operand.hbm [shape: f32[6,8,128], index: 12, kind: output, shape index: {1}]   ;;  %s3825_s13 = inlined_call_operand.hbm [shape: f32[6,8,128], index: 13, kind: output, shape index: {2}]   ;;  %s3826_s14 = inlined_call_operand.hbm [shape: f32[6,8,8], index: 14, kind: output, shape index: {3}]  }
   0x1   :  { %3843 = sst [smem:[#allocation34_spill]] %s3813_s1  ;;  %s20_s15 = sshll.u32 %s3812_s0, 4  ;;  %s21_s15 = int_to_ptr.vmem [resolvable:$true] %s20_s15 }
   0x2   :  { %3844 = sst [smem:[#allocation35_spill]] %s3817_s5  ;;  %s2799_s16 = scalar_lea.vmem %s21_s15, 128 }
   0x3   :  { %3845 = sst [smem:[#allocation36_spill]] %s3823_s11  ;;  %p2800_p0 = scmp.ne.s32.totalorder %s21_s15, %s2799_s16 }
   0x4   :  { %3846 = sst [smem:[#allocation37_spill]] %s3826_s14  ;;  %p2804_p1 = scmp.lt.s32.totalorder %s21_s15, %s21_s15 }
   0x5   :  { %p2805_p2 = scmp.lt.s32.totalorder %s2799_s16, %s2799_s16 }
   0x7   :  { %p2806_p3 = por %p2805_p2, %p2804_p1 }
   0x9   :  { %p2807_p4 = pnand %p2806_p3, %p2800_p0 }
   0xb   :  { %2810 = shalt.err (!%p2807_p4)  }
   0xc   :  { %s3093_s17 = smov [#allocation6]  }
   0xd   :  { %23 = dma.vmem_to_smem %s21_s15, 128, %s3093_s17, [#allocation5] }
   0xe   :  { %3051 = dma.done.wait [#allocation5], 128 }
   0xf   :  { %3052 = vsyncadd [#allocation5], 4294967168 }
  0x10   :  { %25 = sfence }
  0x11   :  { %26 = vsyncpa [#allocation8], 0 }
  0x12   :  { %27 = vsyncpa [#allocation11], 0 }
  0x13   :  { %28 = vsyncpa [#allocation14], 0 }
  0x14   :  { %29 = vsyncpa [#allocation9], 0 }
  0x15   :  { %31 = vsyncpa [#allocation9 + $0x1], 0 }
  0x16   :  { %32 = vsyncpa [#allocation17], 0 }
  0x17   :  { %34 = vsyncpa [#allocation17 + $0x1], 0 }
  0x18   :  { %35 = vsyncpa [#allocation20], 0 }
  0x19   :  { %37 = vsyncpa [#allocation20 + $0x1], 0  ;;  %s3188_s0 = smov 0   ;;  %s3190_s18 = smov 0  }
  0x1a   :  { %s3192_s19 = smov 0   ;;  %s3194_s20 = smov 0  }
  0x1b LB: > { %3847 = sst [smem:[#allocation28_spill]] %s3079_s0  ;;  %s3209_s21 = sadd.s32 4294967295, %s3091_s20   ;;  %s3091_s20 = sphi %s3194_s20, %s3885_s20   ;;  %s3087_s19 = sphi %s3192_s19, %s3887_s19   ;;  %s3083_s18 = sphi %s3190_s18, %s3889_s18   ;;  %s3079_s0 = sphi %s3188_s0, %s3888_s0  }
  0x1c   : > { %3848 = sst [smem:[#allocation29_spill]] %s3087_s19  ;;  %s3827_s22 = sadd.s32 4294967294, %s3091_s20  }
  0x1d   : > { %3849 = sst [smem:[#allocation30_spill]] %s3091_s20  ;;  %s3213_s23 = sadd.s32 1, %s3091_s20  }
  0x1e   : > { %3850 = sst [smem:[#allocation31_spill]] %s3213_s23  ;;  %s260_s24 = sadd.s32 1, %s3087_s19 }
  0x1f   : > { %s257_s25 = ssub.s32 %s3091_s20, %s3213_s23  ;;  %p270_p5 = scmp.ne.s32.totalorder %s3087_s19, %s3083_s18 }
  0x20   : > { %p258_p6 = scmp.eq.s32.totalorder %s257_s25, 0  ;;  %p271_p7 = scmp.eq.s32.totalorder %s3209_s21, 5 }
  0x21   : > { %p276_p8 = scmp.ne.s32.totalorder %s3083_s18, %s3079_s0  ;;  %p277_p9 = scmp.eq.s32.totalorder %s3827_s22, 5 }
  0x22   : > { %s3226_s26 = scalar_select %p258_p6, %s3087_s19, %s260_s24  }
  0x23   : > { %p3228_p10 = por %p271_p7, %p270_p5  ;;  %p3232_p11 = por %p277_p9, %p276_p8 }
  0x24   : > { %3851 = sst [smem:[#allocation32_spill]] %s3226_s26  ;;  %p2322_p12 = scmp.ge.s32.totalorder %s3091_s20, 1 }
  0x25   : > { %s3852_s27 = scalar_select %p3228_p10, 1, 0 }
  0x26   : > { %s3853_s28 = scalar_select %p3232_p11, 1, 0 }
  0x27   : > { %p362_p13 = scmp.lt.s32.totalorder %s3091_s20, 7  ;;  %p3832_p1 = scmp.eq.s32.totalorder %s3209_s21, 0 }
  0x28   : > { %3854 = sst [smem:[#allocation33_spill]] %s3853_s28  ;;  %s3094_s30 = smov [#allocation10]  }
  0x29   : > { %p3240_p2 = pnand %p2322_p12, %p362_p13  ;;  %s396_s15 = sshll.u32 %s3094_s30, 4  ;;  %s397_s15 = int_to_ptr.vmem [resolvable:$true] %s396_s15 }
  0x2a   : > { %s3095_s17 = smov [#allocation7]   ;;  %s3857_s5 = sld [smem:[#allocation35_spill]] }
  0x2b   : > { %s3855_s29 = scalar_select %p3240_p2, 1, 0 }
  0x2c   : > { %p2539_p3 = pneg %p3240_p2  ;;  %s374_s24 = sshll.u32 %s3095_s17, 4  ;;  %s3252_s24 = int_to_ptr.vmem [resolvable:$true] %s374_s24 }
  0x2e   : > { %p3248_p4 = pnand %p3832_p1, %p2539_p3 }
  0x30   : > { %s2811_s26 = scalar_lea.hbm %s3857_s5, 6144  ;;  %p3262_p6 = pneg %p3248_p4 }
  0x31   : > { %p2812_p5 = scmp.ne.s32.totalorder %s3857_s5, %s2811_s26  ;;  %p2818_p9 = scmp.lt.u32.totalorder %s2811_s26, %s3857_s5 }
  0x33   : > { %p2814_p7 = pnand %p3262_p6, %p2812_p5 }
  0x35   : > { %p2815_p8 = pneg %p2814_p7 }
  0x37   : > { %p2820_p12 = pnand %p2818_p9, %p2815_p8 }
  0x39   : > { %2823 = shalt.err (!%p2820_p12)
}
  0x3a   : > { %s2824_s22 = scalar_lea.vmem %s397_s15, 6144  ;;  %p2832_p1 = scmp.lt.s32.totalorder %s397_s15, %s397_s15 }
  0x3b   : > { %p2825_p13 = scmp.ne.s32.totalorder %s397_s15, %s2824_s22  ;;  %p2833_p11 = scmp.lt.s32.totalorder %s2824_s22, %s2824_s22 }
  0x3d   : > { %p2827_p3 = pnand %p2825_p13, %p3262_p6  ;;  %p2834_p10 = por %p2833_p11, %p2832_p1 }
  0x3f   : > { %p2828_p0 = pneg %p2827_p3 }
  0x41   : > { %p2835_p2 = pnand %p2834_p10, %p2828_p0 }
  0x43   : > { %2838 = shalt.err (!%p2835_p2)
}
  0x44   : > { %s3840_s19 = smov 192   ;;  %s3841_s23 = smov 12  }
  0x45   : > { %2545 = dma.hbm_to_vmem [thread:$0]  (!%p3248_p4), %s3857_s5, 6144, %s397_s15, [#allocation11], %s3840_s19, %s3840_s19, %s3841_s23  }
  0x46   : > { %s3859_s1 = sld [smem:[#allocation34_spill]] }
  0x4c   : > { %s2839_s0 = scalar_lea.hbm %s3859_s1, 4096 }
  0x4d   : > { %p2840_p10 = scmp.ne.s32.totalorder %s3859_s1, %s2839_s0  ;;  %p2846_p1 = scmp.lt.u32.totalorder %s2839_s0, %s3859_s1 }
  0x4f   : > { %p2842_p11 = pnand %p2840_p10, %p3262_p6 }
  0x51   : > { %p2843_p0 = pneg %p2842_p11 }
  0x53   : > { %p2848_p2 = pnand %p2846_p1, %p2843_p0 }
  0x55   : > { %2851 = shalt.err (!%p2848_p2)
}
  0x56   : > { %s2852_s15 = scalar_lea.vmem %s3252_s24, 4096  ;;  %p2860_p9 = scmp.lt.s32.totalorder %s3252_s24, %s3252_s24 }
  0x57   : > { %p2853_p5 = scmp.ne.s32.totalorder %s3252_s24, %s2852_s15  ;;  %p2861_p12 = scmp.lt.s32.totalorder %s2852_s15, %s2852_s15 }
  0x59   : > { %p2855_p7 = pnand %p2853_p5, %p3262_p6  ;;  %p2862_p13 = por %p2861_p12, %p2860_p9 }
  0x5b   : > { %p2856_p8 = pneg %p2855_p7 }
  0x5d   : > { %p2863_p3 = pnand %p2862_p13, %p2856_p8 }
  0x5f   : > { %2866 = shalt.err (!%p2863_p3)
}
  0x60   : > { %s3842_s20 = smov 128   ;;  %s3099_s11 = smov 8  }
  0x61   : > { %2542 = dma.hbm_to_vmem [thread:$0]  (!%p3248_p4), %s3859_s1, 4096, %s3252_s24, [#allocation8], %s3842_s20, %s3842_s20, %s3099_s11  }
  0x62   : > { %s3100_s26 = smov [#allocation12]   ;;  %s3101_s25 = smov [#allocation13]  }
  0x63   : > { %s409_s28 = sshll.u32 %s3100_s26, 4  ;;  %s428_s17 = sshll.u32 %s3101_s25, 4  ;;  %s410_s28 = int_to_ptr.vmem [resolvable:$true] %s409_s28  ;;  %s3307_s17 = int_to_ptr.vmem [resolvable:$true] %s428_s17 }
  0x64   : > { %s2867_s19 = scalar_lea.hbm %s3818_s6, 3072 }
  0x65   : > { %p2868_p10 = scmp.ne.s32.totalorder %s3818_s6, %s2867_s19  ;;  %p2874_p1 = scmp.lt.u32.totalorder %s2867_s19, %s3818_s6 }
  0x67   : > { %p2870_p11 = pnand %p2868_p10, %p3262_p6 }
  0x69   : > { %p2871_p0 = pneg %p2870_p11 }
  0x6b   : > { %p2876_p2 = pnand %p2874_p1, %p2871_p0 }
  0x6d   : > { %2879 = shalt.err (!%p2876_p2)
}
  0x6e   : > { %s2880_s0 = scalar_lea.vmem %s410_s28, 3072  ;;  %p2888_p9 = scmp.lt.s32.totalorder %s410_s28, %s410_s28 }
  0x6f   : > { %p2881_p5 = scmp.ne.s32.totalorder %s410_s28, %s2880_s0  ;;  %p2889_p12 = scmp.lt.s32.totalorder %s2880_s0, %s2880_s0 }
  0x71   : > { %p2883_p7 = pnand %p2881_p5, %p3262_p6  ;;  %p2890_p13 = por %p2889_p12, %p2888_p9 }
  0x73   : > { %p2884_p8 = pneg %p2883_p7 }
  0x75   : > { %p2891_p3 = pnand %p2890_p13, %p2884_p8 }
  0x77   : > { %2894 = shalt.err (!%p2891_p3)
}
  0x78   : > { %s3860_s5 = smov 12   ;;  %s3861_s23 = smov 192  }
  0x79   : > { %2548 = dma.hbm_to_vmem [thread:$0]  (!%p3248_p4), %s3818_s6, 3072, %s410_s28, [#allocation11], %s3861_s23, %s3861_s23, %s3860_s5  }
  0x7a   : > { %s2895_s15 = scalar_lea.hbm %s3821_s9, 4096 }
  0x7b   : > { %p2896_p10 = scmp.ne.s32.totalorder %s3821_s9, %s2895_s15  ;;  %p2902_p1 = scmp.lt.u32.totalorder %s2895_s15, %s3821_s9 }
  0x7d   : > { %p2898_p11 = pnand %p2896_p10, %p3262_p6 }
  0x7f   : > { %p2899_p0 = pneg %p2898_p11 }
  0x81   : > { %p2904_p2 = pnand %p2902_p1, %p2899_p0 }
  0x83   : > { %2907 = shalt.err (!%p2904_p2)
}
  0x84   : > { %s2908_s28 = scalar_lea.vmem %s3307_s17, 4096  ;;  %p2916_p9 = scmp.lt.s32.totalorder %s3307_s17, %s3307_s17 }
  0x85   : > { %p2909_p5 = scmp.ne.s32.totalorder %s3307_s17, %s2908_s28  ;;  %p2917_p12 = scmp.lt.s32.totalorder %s2908_s28, %s2908_s28 }
  0x87   : > { %p2911_p7 = pnand %p2909_p5, %p3262_p6  ;;  %p2918_p13 = por %p2917_p12, %p2916_p9 }
  0x89   : > { %p2912_p8 = pneg %p2911_p7 }
  0x8b   : > { %p2919_p3 = pnand %p2918_p13, %p2912_p8 }
  0x8d   : > { %2922 = shalt.err (!%p2919_p3)
}
  0x8e   : > { %s3862_s20 = smov 128   ;;  %p3863_p10 = scmp.ne.s32.totalorder %s3855_s29, 0 }
  0x8f   : > { %2551 = dma.hbm_to_vmem [thread:$0]  (!%p3248_p4), %s3821_s9, 4096, %s3307_s17, [#allocation14], %s3862_s20, %s3862_s20, %s3099_s11  }
  0x90   : > { %447 = sbr.rel (%p3863_p10) target bundleno = 1887 (0x75f), region = 60  ;;  %p3864_p6 = scmp.eq.s32.totalorder (!%p3863_p10), %s3209_s21, 0 }
  0x97   : > { %3054 = dma.done.wait (%p3864_p6), [#allocation8], 4096   ;;  %p3865_p11 = pmov %p3864_p6 }
  0x98   : > { %p3866_p0 = pmov %p3864_p6 }
  0x99   : > { %3056 = vsyncadd (%p3865_p11), [#allocation8], 4294963200 }
  0x9a   : > { %3058 = dma.done.wait (%p3866_p0), [#allocation11], 9216   ;;  %p3867_p1 = pmov %p3866_p0 }
  0x9b   : > { %p3868_p2 = pmov %p3866_p0 }
  0x9c   : > { %3060 = vsyncadd (%p3867_p1), [#allocation11], 4294958080 }
  0x9d   : > { %3062 = dma.done.wait (%p3868_p2), [#allocation14], 4096   ;;  %p3869_p4 = pmov %p3866_p0 }
  0x9e   : > { %s3371_s29 = sand.u32 1, %s3083_s18   ;;  %p3870_p5 = scmp.ne.s32.totalorder %s3209_s21, 0 }
  0x9f   : > { %3064 = vsyncadd (%p3869_p4), [#allocation14], 4294963200  ;;  %s2332_s16 = sshll.u32 %s3371_s29, 4  ;;  %s3375_s30 = sshll.u32 %s3371_s29, 3  ;;  %v518_v0 = vld [vmem:[%s3815_s3] sm:$0xff] (!%p3870_p5) }
  0xa0   : > { %s3377_s11 = scalar_lea.vmem [#allocation15], %s2332_s16  ;;  %517 = sbr.rel (%p3870_p5) target bundleno = 167 (0xa7), region = 80  ;;  %v520_v1 = vld [vmem:[%s3814_s2] sm:$0xff] (!%p3870_p5)  ;;  %519 = vst [vmem:[#allocation3] sm:$0xff] (!%p3870_p5), %v518_v0 }
  0xa1   : > { %521 = vst [vmem:[#allocation4] sm:$0xff] (!%p3870_p5), %v520_v1 }
  0xa7 PF: > { %v2621_v2 = vld [vmem:[#allocation10 + $0x4] ss:$12 sps:$4 sm:$0xff]   ;;  %v2623_v3 = vld [vmem:[#allocation10] ss:$12 sps:$4 sm:$0xff]   ;;  %v2624_v4 = vld [vmem:[#allocation10 + $0x1c] ss:$12 sps:$4 sm:$0xff]  }
  0xa8   : > { %906 = vmatprep.subr.bf16.mxu0 %v2621_v2  ;;  %v2626_v5 = vld [vmem:[#allocation10 + $0x18] ss:$12 sps:$4 sm:$0xff]   ;;  %v2627_v6 = vld [vmem:[#allocation10 + $0x34] ss:$12 sps:$4 sm:$0xff]   ;;  %v2629_v7 = vld [vmem:[#allocation10 + $0x30] ss:$12 sps:$4 sm:$0xff]  }
  0xa9   : > { %907 = vmatpush1.bf16.msra.mxu0 %v2623_v3  ;;  %v2630_v8 = vld [vmem:[#allocation10 + $0x4c] ss:$12 sps:$4 sm:$0xff]   ;;  %s3391_s24 = sshll.u32 %s3209_s21, 7  ;;  %v2632_v9 = vld [vmem:[#allocation10 + $0x48] ss:$12 sps:$4 sm:$0xff]   ;;  %v3102_v11 = vmov 0  }
  0xaa   : > { %908 = vmatprep.subr.bf16.mxu0 %v2624_v4  ;;  %s527_s0 = sadd.s32 1, %s3391_s24  ;;  %v2633_v10 = vld [vmem:[#allocation10 + $0x64] ss:$12 sps:$4 sm:$0xff]   ;;  %s532_s28 = sadd.s32 2, %s3391_s24  ;;  %2620 = vset.pattern.permute.xlu0 %v3102_v11  ;;  %v2635_v12 = vld [vmem:[#allocation10 + $0x60] ss:$12 sps:$4 sm:$0xff]  }
  0xab   : > { %s537_s20 = sadd.s32 3, %s3391_s24  ;;  %s542_s5 = sadd.s32 4, %s3391_s24  ;;  %2619 = vset.pattern.permute.xlu1 %v3102_v11  ;;  %v2636_v13 = vld [vmem:[#allocation10 + $0x7c] ss:$12 sps:$4 sm:$0xff]   ;;  %v2638_v14 = vld [vmem:[#allocation10 + $0x78] ss:$12 sps:$4 sm:$0xff]  }
  0xac   : > { %s3398_s23 = sld [smem:[#allocation6 + %s3391_s24]]  ;;  %s547_s14 = sadd.s32 5, %s3391_s24  ;;  %v2639_v15 = vld [vmem:[#allocation10 + $0x94] ss:$12 sps:$4 sm:$0xff]   ;;  %v2641_v17 = vld [vmem:[#allocation10 + $0x90] ss:$12 sps:$4 sm:$0xff]  }
  0xad   : > { %909 = vmatpush1.bf16.msra.mxu0 %v2626_v5  ;;  %s3400_s16 = sld [smem:[#allocation6 + %s527_s0]]  ;;  %s552_s17 = sadd.s32 6, %s3391_s24  ;;  %v2663_v16 = vld [vmem:[#allocation10 + $0xc8] ss:$12 sps:$4 sm:$0xff]   ;;  %v2668_v19 = vld [vmem:[#allocation10 + $0xe0] ss:$12 sps:$4 sm:$0xff]  }
  0xae   : > { %910 = vmatprep.subr.bf16.mxu0 %v2627_v6  ;;  %s3404_s25 = sld [smem:[#allocation6 + %s532_s28]]  ;;  %s557_s19 = sadd.s32 7, %s3391_s24  ;;  %2456 = vmatprep.subr.bf16.mxu1 %v2663_v16  ;;  %v2666_v18 = vld [vmem:[#allocation10 + $0x8] ss:$12 sps:$4 sm:$0xff]   ;;  %v2642_v20 = vld [vmem:[#allocation10 + $0xac] ss:$12 sps:$4 sm:$0xff]  }
  0xaf   : > { %s3406_s22 = sld [smem:[#allocation6 + %s537_s20]]  ;;  %2457 = vmatpush3.bf16.msra.mxu1 %v2666_v18  ;;  %v2671_v21 = vld [vmem:[#allocation10 + $0x20] ss:$12 sps:$4 sm:$0xff]   ;;  %v2644_v22 = vld [vmem:[#allocation10 + $0xa8] ss:$12 sps:$4 sm:$0xff]   ;;  %v562_v24 = vld [vmem:[#allocation4] sm:$0xff] }
  0xb0   : > { %s3408_s15 = sld [smem:[#allocation6 + %s542_s5]]  ;;  %2458 = vmatprep.subr.bf16.mxu1 %v2668_v19  ;;  %v2673_v23 = vld [vmem:[#allocation10 + $0xf8] ss:$12 sps:$4 sm:$0xff]   ;;  %v568_v25 = vpack.c.bf16 %v562_v24, %v562_v24  ;;  %v2647_v28 = vld [vmem:[#allocation10 + $0xc0] ss:$12 sps:$4 sm:$0xff]   ;;  %v3103_v61 = vmov 0.0  }
  0xb1   : > { %911 = vmatpush1.bf16.msra.mxu0 %v2629_v7  ;;  %s3413_s0 = sld [smem:[#allocation6 + %s547_s14]]  ;;  %v2674_v26 = vld [vmem:[#allocation10 + $0x38] ss:$12 sps:$4 sm:$0xff]   ;;  %v2648_v32 = vld [vmem:[#allocation10 + $0xdc] ss:$12 sps:$4 sm:$0xff]   ;;  %vm3104_vm0 = vmmov 0  }
  0xb2   : > { %912 = vmatprep.subr.bf16.mxu0 %v2630_v8  ;;  %s3415_s26 = sld [smem:[#allocation6 + %s552_s17]]  ;;  %v2645_v27 = vld [vmem:[#allocation10 + $0xc4] ss:$12 sps:$4 sm:$0xff]   ;;  %938 = vmatprep.mubr.bf16.mxu0 %v568_v25  ;;  %s524_s17 = scalar_lea.vmem [#allocation7], %s3398_s23  ;;  %v2651_v41 = vld [vmem:[#allocation10 + $0xf4] ss:$12 sps:$4 sm:$0xff]  }
  0xb3   : > { %s3417_s28 = sld [smem:[#allocation6 + %s557_s19]]  ;;  %2459 = vmatpush3.bf16.msra.mxu1 %v2671_v21  ;;  %v525_v29 = vld [vmem:[%s524_s17] sm:$0x1]  ;;  %s529_s19 = scalar_lea.vmem [#allocation7], %s3400_s16  ;;  %979 = vmatprep.mubr.bf16.mxu1 %v568_v25  ;;  %v2678_v38 = vld [vmem:[#allocation10 + $0x110] ss:$12 sps:$4 sm:$0xff]  }
  0xb4   : > { %2460 = vmatprep.subr.bf16.mxu1 %v2673_v23  ;;  %v530_v30 = vld [vmem:[%s529_s19] sm:$0x1]  ;;  %s534_s20 = scalar_lea.vmem [#allocation7], %s3404_s25  ;;  %526 = vst [vmem:[#allocation2] sm:$0x1] %v525_v29  ;;  %v3428_v19 = vld [vmem:[#allocation3] sm:$0xff] }
  0xb5   : > { %913 = vmatpush1.bf16.msra.mxu0 %v2632_v9  ;;  %v535_v31 = vld [vmem:[%s534_s20] sm:$0x1]  ;;  %531 = vst [vmem:[#allocation2 + $0x1] sm:$0x1] %v530_v30  ;;  %s539_s5 = scalar_lea.vmem [#allocation7], %s3406_s22  ;;  %vm1431_vm1 = vcmask 1041409  }
  0xb6   : > { %914 = vmatprep.subr.bf16.mxu0 %v2633_v10  ;;  %536 = vst [vmem:[#allocation2 + $0x2] sm:$0x1] %v535_v31  ;;  %v540_v33 = vld [vmem:[%s539_s5] sm:$0x1]  ;;  %s544_s14 = scalar_lea.vmem [#allocation7], %s3408_s15  ;;  %v635_v31 = vlaneseq  ;;  %s3871_s15 = scalar_lea.vmem [#allocation18], %s3375_s30 }
  0xb7   : > { %v545_v34 = vld [vmem:[%s544_s14] sm:$0x1]  ;;  %s549_s1 = scalar_lea.vmem [#allocation7], %s3413_s0  ;;  %2461 = vmatpush3.bf16.msra.mxu1 %v2674_v26  ;;  %541 = vst [vmem:[#allocation2 + $0x3] sm:$0x1] %v540_v33  ;;  %vm1433_vm2 = vcmask 1042434  }
  0xb8   : > { %v550_v35 = vld [vmem:[%s549_s1] sm:$0x1]  ;;  %546 = vst [vmem:[#allocation2 + $0x4] sm:$0x1] %v545_v34  ;;  %s554_s23 = scalar_lea.vmem [#allocation7], %s3415_s26  ;;  %2462 = vmatprep.subr.bf16.mxu1 %v2678_v38  ;;  %vm1435_vm3 = vcmask 1043459   ;;  %s3681_s1 = scalar_lea.hbm %s3824_s12, %s3391_s24 }
  0xb9   : > { %915 = vmatpush1.bf16.msra.mxu0 %v2635_v12  ;;  %551 = vst [vmem:[#allocation2 + $0x5] sm:$0x1] %v550_v35  ;;  %v555_v36 = vld [vmem:[%s554_s23] sm:$0x1]  ;;  %s559_s16 = scalar_lea.vmem [#allocation7], %s3417_s28  ;;  %vm1437_vm4 = vcmask 1044484  }
  0xba   : > { %916 = vmatprep.subr.bf16.mxu0 %v2636_v13  ;;  %v560_v37 = vld [vmem:[%s559_s16] sm:$0x1]  ;;  %556 = vst [vmem:[#allocation2 + $0x6] sm:$0x1] %v555_v36  ;;  %v2679_v39 = vld [vmem:[#allocation10 + $0x50] ss:$12 sps:$4 sm:$0xff]  }
  0xbb   : > { %561 = vst [vmem:[#allocation2 + $0x7] sm:$0x1] %v560_v37  ;;  %v2650_v40 = vld [vmem:[#allocation10 + $0xd8] ss:$12 sps:$4 sm:$0xff]   ;;  %2463 = vmatpush3.bf16.msra.mxu1 %v2679_v39  ;;  %v2683_v42 = vld [vmem:[#allocation10 + $0x128] ss:$12 sps:$4 sm:$0xff]  }
  0xbc   : > { %v2684_v43 = vld [vmem:[#allocation10 + $0x68] ss:$12 sps:$4 sm:$0xff]   ;;  %2464 = vmatprep.subr.bf16.mxu1 %v2683_v42  ;;  %v2653_v44 = vld [vmem:[#allocation10 + $0xf0] ss:$12 sps:$4 sm:$0xff]   ;;  %v2654_v45 = vld [vmem:[#allocation10 + $0x10c] ss:$12 sps:$4 sm:$0xff]  }
  0xbd   : > { %917 = vmatpush1.bf16.msra.mxu0 %v2638_v14  ;;  %v2688_v46 = vld [vmem:[#allocation10 + $0x140] ss:$12 sps:$4 sm:$0xff]   ;;  %v2656_v48 = vld [vmem:[#allocation10 + $0x108] ss:$12 sps:$4 sm:$0xff]   ;;  %v2693_v49 = vld [vmem:[#allocation10 + $0x158] ss:$12 sps:$4 sm:$0xff]  }
  0xbe   : > { %918 = vmatprep.subr.bf16.mxu0 %v2639_v15  ;;  %v2689_v47 = vld [vmem:[#allocation10 + $0x80] ss:$12 sps:$4 sm:$0xff]   ;;  %v2694_v50 = vld [vmem:[#allocation10 + $0x98] ss:$12 sps:$4 sm:$0xff]   ;;  %v2698_v53 = vld [vmem:[#allocation10 + $0x170] ss:$12 sps:$4 sm:$0xff]  }
  0xbf   : > { %2465 = vmatpush3.bf16.msra.mxu1 %v2684_v43  ;;  %v2657_v51 = vld [vmem:[#allocation10 + $0x124] ss:$12 sps:$4 sm:$0xff]   ;;  %v2659_v52 = vld [vmem:[#allocation10 + $0x120] ss:$12 sps:$4 sm:$0xff]   ;;  %v2660_v55 = vld [vmem:[#allocation10 + $0x13c] ss:$12 sps:$4 sm:$0xff]  }
  0xc0   : > { %2466 = vmatprep.subr.bf16.mxu1 %v2688_v46  ;;  %v2699_v54 = vld [vmem:[#allocation10 + $0xb0] ss:$12 sps:$4 sm:$0xff]   ;;  %v2662_v57 = vld [vmem:[#allocation10 + $0x138] ss:$12 sps:$4 sm:$0xff]   ;;  %v2706_v58 = vld [vmem:[#allocation12 + $0x8] ss:$12 sps:$4 sm:$0xff]  }
  0xc1   : > { %919 = vmatpush1.bf16.msra.mxu0 %v2641_v17  ;;  %v2664_v59 = vld [vmem:[#allocation10 + $0x154] ss:$12 sps:$4 sm:$0xff]   ;;  %v2667_v62 = vld [vmem:[#allocation10 + $0x150] ss:$12 sps:$4 sm:$0xff]   ;;  %v2669_v0 = vld [vmem:[#allocation10 + $0x16c] ss:$12 sps:$4 sm:$0xff]  }
  0xc2   : > { %920 = vmatprep.subr.bf16.mxu0 %v2642_v20  ;;  %v565_v56 = vld [vmem:[#allocation2] sm:$0xff]  ;;  %v2672_v1 = vld [vmem:[#allocation10 + $0x168] ss:$12 sps:$4 sm:$0xff]   ;;  %v2712_v6 = vld [vmem:[#allocation12 + $0x50] ss:$12 sps:$4 sm:$0xff]   ;;  %vm1439_vm5 = vcmask 1045509  }
  0xc3   : > { %2467 = vmatpush3.bf16.msra.mxu1 %v2689_v47  ;;  %v567_v60 = vpack.c.bf16 %v565_v56, %v565_v56  ;;  %v2710_v63 = vld [vmem:[#allocation12 + $0x20] ss:$12 sps:$4 sm:$0xff]   ;;  %v2677_v2 = vld [vmem:[#allocation12 + $0x4] ss:$12 sps:$4 sm:$0xff]   ;;  %v2682_v5 = vld [vmem:[#allocation12 + $0x1c] ss:$12 sps:$4 sm:$0xff]  }
  0xc4   : > { %2468 = vmatprep.subr.bf16.mxu1 %v2693_v49  ;;  %v2711_v3 = vld [vmem:[#allocation12 + $0x38] ss:$12 sps:$4 sm:$0xff]   ;;  %v2675_v4 = vld [vmem:[#allocation12] ss:$12 sps:$4 sm:$0xff]   ;;  %v2713_v9 = vld [vmem:[#allocation12 + $0x68] ss:$12 sps:$4 sm:$0xff]  }
  0xc5   : > { %921 = vmatpush1.bf16.msra.mxu0 %v2644_v22  ;;  %v2680_v7 = vld [vmem:[#allocation12 + $0x18] ss:$12 sps:$4 sm:$0xff]   ;;  %v2687_v8 = vld [vmem:[#allocation12 + $0x34] ss:$12 sps:$4 sm:$0xff]   ;;  %v2685_v10 = vld [vmem:[#allocation12 + $0x30] ss:$12 sps:$4 sm:$0xff]   ;;  %v987_v22 = vpack.c.bf16 %v3428_v19, %v3428_v19 }
  0xc6   : > { %922 = vmatprep.subr.bf16.mxu0 %v2645_v27  ;;  %v2692_v12 = vld [vmem:[#allocation12 + $0x4c] ss:$12 sps:$4 sm:$0xff]   ;;  %v2690_v14 = vld [vmem:[#allocation12 + $0x48] ss:$12 sps:$4 sm:$0xff]   ;;  %v2697_v15 = vld [vmem:[#allocation12 + $0x64] ss:$12 sps:$4 sm:$0xff]  }
  0xc7   : > { %2469 = vmatpush3.bf16.msra.mxu1 %v2694_v50  ;;  %v2714_v13 = vld [vmem:[#allocation12 + $0x80] ss:$12 sps:$4 sm:$0xff]   ;;  %v2715_v16 = vld [vmem:[#allocation12 + $0x98] ss:$12 sps:$4 sm:$0xff]   ;;  %v2716_v18 = vld [vmem:[#allocation12 + $0xb0] ss:$12 sps:$4 sm:$0xff]  }
  0xc8   : > { %2470 = vmatprep.subr.bf16.mxu1 %v2698_v53  ;;  %v2695_v17 = vld [vmem:[#allocation12 + $0x60] ss:$12 sps:$4 sm:$0xff]   ;;  %v2700_v20 = vld [vmem:[#allocation12 + $0x78] ss:$12 sps:$4 sm:$0xff]   ;;  %v2703_v23 = vld [vmem:[#allocation12 + $0x90] ss:$12 sps:$4 sm:$0xff]  }
  0xc9   : > { %923 = vmatpush1.bf16.msra.mxu0 %v2647_v28  ;;  %v2705_v21 = vld [vmem:[#allocation12 + $0x94] ss:$12 sps:$4 sm:$0xff]   ;;  %v2709_v24 = vld [vmem:[#allocation12 + $0xac] ss:$12 sps:$4 sm:$0xff]   ;;  %vm1441_vm6 = vcmask 1046534   ;;  %vm1443_vm7 = vcmask 1047559  }
  0xca   : > { %924 = vmatprep.subr.bf16.mxu0 %v2648_v32  ;;  %v2707_v25 = vld [vmem:[#allocation12 + $0xa8] ss:$12 sps:$4 sm:$0xff]   ;;  %v3433_v32 = vshrl.u32 %v635_v31, 7  ;;  %v633_v35 = vld [vmem:[%s3819_s7] sm:$0x7]  ;;  %vm1446_vm8 = vcmask 64512  }
  0xcb   : > { %2471 = vmatpush3.bf16.msra.mxu1 %v2699_v54  ;;  %v1020_v36 = vld [vmem:[%s3820_s8] sm:$0x7]  ;;  %s3872_s17 = scalar_lea.vmem [#allocation19], %s3375_s30  ;;  %s3873_s19 = scalar_lea.vmem [#allocation16], %s3375_s30 }
  0xcc   : > { %2487 = vmatprep.subr.bf16.mxu1 %v3103_v61  ;;  %v3436_v33 = vsub.s32 0, %v3433_v32  ;;  %v3445_v39 = vsub.s32 1, %v3433_v32  ;;  %s2068_s14 = sand.u32 1, %s3209_s21   ;;  %s3874_s26 = smov %s3873_s19 }
  0xcd   : > { %925 = vmatpush1.bf16.msra.mxu0 %v2650_v40  ;;  %s2106_s25 = sshll.u32 %s3874_s26, 4  ;;  %s3685_s22 = scalar_lea.sflag [#allocation17], %s2068_s14  ;;  %s2107_s25 = int_to_ptr.vmem [resolvable:$true] %s2106_s25 }
  0xce   : > { %926 = vmatprep.subr.bf16.mxu0 %v2651_v41  ;;  %980 = vmatmul.mubr.bf16.vlgmr.msra.gmra.mrb[0].mxu1 %v567_v60  ;;  %v638_v41 = vrot.slane %v633_v35, %v3436_v33  ;;  %v1025_v42 = vrot.slane %v1020_v36, %v3436_v33  ;;  %v642_v43 = vrot.slane %v633_v35, %v3445_v39  ;;  %p3875_p8 = scmp.ne.s32.totalorder %s3852_s27, 0  ;;  %s3106_s0 = smov [#allocation16]  }
  0xcf   : > { %2488 = vmatpush3.bf16.msra.mxu1 %v2706_v58  ;;  %2503 = vmatprep.mubr.msk.bf16.mxu1 %vm3104_vm0, %v3103_v61  ;;  %s2927_s28 = sshll.u32 %s3106_s0, 4  ;;  %s2928_s28 = int_to_ptr.vmem [resolvable:$false] %s2927_s28 }
  0xd0   : > { %2489 = vmatprep.subr.bf16.mxu1 %v3103_v61  ;;  %p2930_p13 = scmp.lt.s32.totalorder %s2107_s25, %s2928_s28 }
  0xd1   : > { %927 = vmatpush1.bf16.msra.mxu0 %v2653_v44  ;;  %v1029_v44 = vrot.slane %v1020_v36, %v3445_v39 }
  0xd2   : > { %928 = vmatprep.subr.bf16.mxu0 %v2654_v45  ;;  %v2507_v45 = vadd.f32 %v1025_v42, %v638_v41  ;;  %v3498_v41 = vld [vmem:[%s3816_s4 + $0x20] sm:$0xff] }
  0xd3   : > { %2490 = vmatpush3.bf16.msra.mxu1 %v2710_v63  ;;  %v2509_v47 = vadd.f32 %v1029_v44, %v642_v43 }
  0xd4   : > { %2491 = vmatprep.subr.bf16.mxu1 %v3103_v61 }
  0xd5   : > { %929 = vmatpush1.bf16.msra.mxu0 %v2656_v48 }
  0xd6   : > { %930 = vmatprep.subr.bf16.mxu0 %v2657_v51 }
  0xd7   : > { %2492 = vmatpush3.bf16.msra.mxu1 %v2711_v3  ;;  %v3105_v3 = vmov 1966171168  }
  0xd8   : > { %2493 = vmatprep.subr.bf16.mxu1 %v3103_v61 }
  0xd9   : > { %931 = vmatpush1.bf16.msra.mxu0 %v2659_v52 }
  0xda   : > { %932 = vmatprep.subr.bf16.mxu0 %v2660_v55 }
  0xdb   : > { %2494 = vmatpush3.bf16.msra.mxu1 %v2712_v6 }
  0xdc   : > { %2495 = vmatprep.subr.bf16.mxu1 %v3103_v61 }
  0xdd   : > { %933 = vmatpush1.bf16.msra.mxu0 %v2662_v57  ;;  %v3452_v57 = vsub.s32 2, %v3433_v32 }
  0xde   : > { %934 = vmatprep.subr.bf16.mxu0 %v2664_v59 }
  0xdf   : > { %2496 = vmatpush3.bf16.msra.mxu1 %v2713_v9  ;;  %v1033_v58 = vrot.slane %v1020_v36, %v3452_v57  ;;  %v3491_v36 = vld [vmem:[%s3816_s4 + $0x18] sm:$0xff] }
  0xe0   : > { %2497 = vmatprep.subr.bf16.mxu1 %v3103_v61 }
  0xe1   : > { %935 = vmatpush1.bf16.msra.mxu0 %v2667_v62 }
  0xe2   : > { %936 = vmatprep.subr.bf16.mxu0 %v2669_v0 }
  0xe3   : > { %2498 = vmatpush3.bf16.msra.mxu1 %v2714_v13 }
  0xe4   : > { %2499 = vmatprep.subr.bf16.mxu1 %v3103_v61 }
  0xe5   : > { %937 = vmatpush1.bf16.msra.mxu0 %v2672_v1 }
  0xe6   : > { %1165 = vmatprep.subr.bf16.mxu0 %v2677_v2 }
  0xe7   : > { %2500 = vmatpush3.bf16.msra.mxu1 %v2715_v16 }
  0xe8   : > { %939 = vmatmul.mubr.bf16.vlgmr.msra.gmra.mrb[0].mxu0 %v567_v60  ;;  %2501 = vmatprep.subr.bf16.mxu1 %v3103_v61  ;;  %v646_v60 = vrot.slane %v633_v35, %v3452_v57 }
  0xe9   : > { %1166 = vmatpush1.bf16.msra.mxu0 %v2675_v4  ;;  %1197 = vmatprep.mubr.bf16.mxu0 %v3102_v11  ;;  %v2702_v11 = vld [vmem:[#allocation12 + $0x7c] ss:$12 sps:$4 sm:$0xff]   ;;  %v1278_v4 = vunpack.c.l.s4 %v3105_v3 }
  0xea   : > { %1167 = vmatprep.subr.bf16.mxu0 %v2682_v5 }
  0xeb   : > { %2502 = vmatpush3.bf16.msra.mxu1 %v2716_v18  ;;  %v1279_v6 = vunpack.c.0.s8 %v1278_v4  ;;  %v3470_v18 = vld [vmem:[%s3816_s4] sm:$0xff] }
  0xed   : > { %1168 = vmatpush1.bf16.msra.mxu0 %v2680_v7 }
  0xee   : > { %1169 = vmatprep.subr.bf16.mxu0 %v2687_v8  ;;  %2504 = vmatmul.mubr.bf16.vlgmr.msra.gmra.mrb[4].mxu1 %v987_v22 }
  0xf1   : > { %1170 = vmatpush1.bf16.msra.mxu0 %v2685_v10 }
  0xf2   : > { %1171 = vmatprep.subr.bf16.mxu0 %v2692_v12  ;;  %v1282_v12 = vsub.s32 %v1279_v6, %v3433_v32 }
  0xf5   : > { %1172 = vmatpush1.bf16.msra.mxu0 %v2690_v14 }
  0xf6   : > { %1173 = vmatprep.subr.bf16.mxu0 %v2697_v15 }
  0xf9   : > { %1174 = vmatpush1.bf16.msra.mxu0 %v2695_v17 }
  0xfa   : > { %1175 = vmatprep.subr.bf16.mxu0 %v2702_v11 }
  0xfd   : > { %1176 = vmatpush1.bf16.msra.mxu0 %v2700_v20 }
  0xfe   : > { %1177 = vmatprep.subr.bf16.mxu0 %v2705_v21 }
 0x101   : > { %1178 = vmatpush1.bf16.msra.mxu0 %v2703_v23 }
 0x102   : > { %1179 = vmatprep.subr.bf16.mxu0 %v2709_v24 }
 0x105   : > { %1180 = vmatpush1.bf16.msra.mxu0 %v2707_v25 }
 0x108   : > { %1198 = vmatmul.mubr.bf16.vlgmr.msra.gmra.mrb[0].mxu0 %v987_v22  ;;  %v3476_v22 = vld [vmem:[%s3816_s4 + $0x10] sm:$0xff] }
 0x1a1   : > { %v2472_v26 = vpop.f32.mrb[0].mxu1 }
 0x1a2   : > { %v2473_v27 = vpop.f32.mrb[1].mxu1 }
 0x1a3   : > { %v2474_v28 = vadd.f32 %v2473_v27, %v2472_v26  ;;  %v2475_v29 = vpop.f32.mrb[2].mxu1 }
 0x1a4   : > { %v2476_v30 = vpop.f32.mrb[3].mxu1  ;;  %v3484_v29 = vld [vmem:[%s3816_s4 + $0x8] sm:$0xff] }
 0x1a5   : > { %v982_v0 = vadd.f32 %v2474_v28, %v646_v60 }
 0x1c1   : > { %v1240_v34 = vpop.f32.mrb[4].mxu1 }
 0x1c2   : > { %v2505_v37 = vpop.f32.mrb[5].mxu1  ;;  %v1241_v62 = vadd.f32 %v1240_v34, %v1033_v58 }
 0x1c3   : > { %v1243_v38 = vpop.f32.mrb[6].mxu1 }
 0x1c4   : > { %v2506_v40 = vpop.f32.mrb[7].mxu1 }
 0x1db   : > { %v1199_v46 = vpop.f32.mrb[0].mxu0 }
 0x1dc   : > { %v2508_v48 = vadd.f32 %v2507_v45, %v1199_v46  ;;  %v1201_v49 = vpop.f32.mrb[1].mxu0  ;;  %v3505_v45 = vld [vmem:[%s3816_s4 + $0x28] sm:$0xff] }
 0x1dd   : > { %v1203_v50 = vpop.f32.mrb[2].mxu0  ;;  %v2510_v53 = vadd.f32 %v2509_v47, %v1201_v49 }
 0x1de   : > { %v2410_v51 = vmul.f32 -1.442695, %v2508_v48  ;;  %v1204_v52 = vpop.f32.mrb[3].mxu0  ;;  %v3512_v48 = vld [vmem:[%s3816_s4 + $0x30] sm:$0xff] }
 0x1df   : > { %v2411_v54 = vmul.f32 -1.442695, %v2510_v53 }
 0x1e0   : > { %2765 = vpow2.f32 %v2410_v51  ;;  %v3519_v51 = vld [vmem:[%s3816_s4 + $0x38] sm:$0xff] }
 0x1e1   : > { %2767 = vpow2.f32 %v2411_v54  ;;  %v1398_v54 = vand.u32 127, %v635_v31 }
 0x1ea   : > { %v2766_v55 = vpop.eup %2765 }
 0x1eb   : > { %v1250_v56 = vadd.f32 1.0, %v2766_v55  ;;  %v2768_v59 = vpop.eup %2767 }
 0x1ec   : > { %v1257_v61 = vadd.f32 1.0, %v2768_v59 }
 0x1ed   : > { %2769 = vrcp.f32 %v1250_v56  ;;  %v3525_v56 = vsub.s32 %v1398_v54, %v3433_v32 }
 0x1ee   : > { %2771 = vrcp.f32 %v1257_v61 }
 0x1f7   : > { %v2770_v63 = vpop.eup %2769 }
 0x1f8   : > { %v1260_v1 = vmul.f32 %v2770_v63, %v1241_v62  ;;  %v2772_v5 = vpop.eup %2771 }
 0x1f9   : > { %v1263_v7 = vsub.f32 1.0, %v2772_v5  ;;  %v1265_v9 = vmul.f32 %v2772_v5, %v3428_v19 }
 0x1fa   : > { %v1261_v2 = vadd.f32 %v1260_v1, %v982_v0 }
 0x1fc   : > { %2773 = vtanh.f32 %v1261_v2 }
 0x206   : > { %v2774_v8 = vpop.eup %2773 }
 0x207   : > { %v1264_v10 = vmul.f32 %v2774_v8, %v1263_v7 }
 0x209   : > { %v3458_v13 = vadd.f32 %v1265_v9, %v1264_v10 }
 0x20b   : > { %2061 = vst [vmem:[#allocation3] sm:$0xff] %v3458_v13  ;;  %2019 = vst [vmem:[%s3871_s15] sm:$0xff] %v3458_v13  ;;  %v1283_v14 = vrot.slane %v3458_v13, %v1282_v12  ;;  %v1276_v15 = vcombine.high %v3458_v13, %v3458_v13  ;;  %s2923_s15 = scalar_lea.vmem %s2107_s25, 128 }
 0x20c   : > { %p2924_p7 = scmp.ne.s32.totalorder %s2107_s25, %s2923_s15 }
 0x20d   : > { %v1299_v16 = vrot.slane %v1283_v14, %v1282_v12  ;;  %v1291_v17 = vcombine.high %v1283_v14, %v1283_v14  ;;  %v1290_v11 = vrot.slane %v1276_v15, %v1282_v12 }
 0x20e   : > { %p2925_p9 = pnand %p2924_p7, %p3875_p8 }
 0x20f   : > { %v1328_v19 = vrot.slane %v1299_v16, %v3436_v33  ;;  %v1321_v20 = vcombine.high %v1299_v16, %v1299_v16  ;;  %v1313_v21 = vrot.slane %v1291_v17, %v1282_v12  ;;  %v1306_v23 = vrot.slane %v1290_v11, %v1282_v12 }
 0x210   : > { %v1292_v24 = vcombine.high %v1290_v11, %v1290_v11  ;;  %v1465_v11 = vsub.s32 3, %v3433_v32  ;;  %p2926_p12 = pneg %p2925_p9 }
 0x211   : > { %v1365_v25 = vmul.f32 %v1328_v19, %v3470_v18  ;;  %v1336_v26 = vrot.slane %v1321_v20, %v3436_v33  ;;  %v1332_v27 = vrot.slane %v1313_v21, %v3436_v33  ;;  %v1323_v28 = vcombine.high %v1313_v21, %v1313_v21 }
 0x212   : > { %v1320_v35 = vrot.slane %v1292_v24, %v1282_v12  ;;  %v1344_v38 = vrot.slane %v1306_v23, %v3436_v33  ;;  %v1322_v40 = vcombine.high %v1306_v23, %v1306_v23  ;;  %v1469_v24 = vsub.s32 4, %v3433_v32 }
 0x213   : > { %1373 = vadd.xlane.f32.xlu0 %v1365_v25  ;;  %v1367_v30 = vmul.f32 %v1336_v26, %v3476_v22  ;;  %v1340_v34 = vrot.slane %v1323_v28, %v3436_v33  ;;  %v1366_v37 = vmul.f32 %v1332_v27, %v3484_v29 }
 0x214   : > { %v1348_v43 = vrot.slane %v1320_v35, %v3436_v33  ;;  %v1324_v44 = vcombine.high %v1320_v35, %v1320_v35  ;;  %v1369_v46 = vmul.f32 %v1344_v38, %v3498_v41  ;;  %v1352_v47 = vrot.slane %v1322_v40, %v3436_v33 }
 0x215   : > { %1377 = vadd.xlane.f32.xlu1 %v1367_v30  ;;  %v1368_v42 = vmul.f32 %v1340_v34, %v3491_v36  ;;  %v1473_v35 = vsub.s32 5, %v3433_v32 }
 0x216   : > { %v1370_v49 = vmul.f32 %v1348_v43, %v3505_v45  ;;  %v1356_v50 = vrot.slane %v1324_v44, %v3436_v33  ;;  %v1371_v52 = vmul.f32 %v1352_v47, %v3512_v48  ;;  %v1481_v47 = vsub.s32 7, %v3433_v32 }
 0x217   : > { %1375 = vadd.xlane.f32.xlu0 %v1366_v37 }
 0x218   : > { %v1372_v53 = vmul.f32 %v1356_v50, %v3519_v51 }
 0x219   : > { %1379 = vadd.xlane.f32.xlu1 %v1368_v42  ;;  %v1477_v42 = vsub.s32 6, %v3433_v32  ;;  %v2753_v32 = vld [vmem:[#allocation13 + $0xc0] ss:$8 sps:$4 sm:$0xff]  }
 0x21b   : > { %1381 = vadd.xlane.f32.xlu0 %v1369_v46 }
 0x21d   : > { %1383 = vadd.xlane.f32.xlu1 %v1370_v49 }
 0x21f   : > { %1385 = vadd.xlane.f32.xlu0 %v1371_v52 }
 0x221   : > { %1387 = vadd.xlane.f32.xlu1 %v1372_v53 }
 0x2a0   : > { %v1374_v55 = vpop.xlane.xlu0 %1373 }
 0x2a1   : > { %v1402_v60 = vrot.slane %v1374_v55, %v3525_v56 }
 0x2a2   : > { %v1378_v58 = vpop.xlane.xlu1 %1377 }
 0x2a3   : > { %v1410_v62 = vrot.slane %v1378_v58, %v3525_v56 }
 0x2a4   : > { %v1376_v59 = vpop.xlane.xlu0 %1375 }
 0x2a5   : > { %v1406_v61 = vrot.slane %v1376_v59, %v3525_v56 }
 0x2a6   : > { %v1380_v63 = vpop.xlane.xlu1 %1379 }
 0x2a7   : > { %v1432_v0 = vsel %vm1431_vm1, %v1406_v61, %v1402_v60  ;;  %v1414_v31 = vrot.slane %v1380_v63, %v3525_v56 }
 0x2a8   : > { %v1434_v1 = vsel %vm1433_vm2, %v1410_v62, %v1432_v0  ;;  %v1382_v2 = vpop.xlane.xlu0 %1381 }
 0x2a9   : > { %v1436_v3 = vsel %vm1435_vm3, %v1414_v31, %v1434_v1  ;;  %v1418_v4 = vrot.slane %v1382_v2, %v3525_v56 }
 0x2aa   : > { %v1384_v5 = vpop.xlane.xlu1 %1383 }
 0x2ab   : > { %v1438_v6 = vsel %vm1437_vm4, %v1418_v4, %v1436_v3  ;;  %v1422_v7 = vrot.slane %v1384_v5, %v3525_v56 }
 0x2ac   : > { %v1386_v8 = vpop.xlane.xlu0 %1385 }
 0x2ad   : > { %v1426_v9 = vrot.slane %v1386_v8, %v3525_v56  ;;  %v1440_v10 = vsel %vm1439_vm5, %v1422_v7, %v1438_v6 }
 0x2ae   : > { %v1388_v12 = vpop.xlane.xlu1 %1387 }
 0x2af   : > { %v1430_v14 = vrot.slane %v1388_v12, %v3525_v56  ;;  %v1442_v15 = vsel %vm1441_vm6, %v1426_v9, %v1440_v10 }
 0x2b1   : > { %v1444_v16 = vsel %vm1443_vm7, %v1430_v14, %v1442_v15 }
 0x2b2   : > { %v1447_v17 = vsel %vm1446_vm8, %v1444_v16, -inf }
 0x2b3   : > { %1448 = vmax.xlane.f32.xlu0 %v1447_v17 }
 0x340   : > { %v1449_v19 = vpop.xlane.xlu0 %1448 }
 0x341   : > { %v1454_v20 = vrot.slane %v1449_v19, %v3436_v33  ;;  %v1458_v21 = vrot.slane %v1449_v19, %v3445_v39  ;;  %v1462_v23 = vrot.slane %v1449_v19, %v3452_v57  ;;  %v1466_v25 = vrot.slane %v1449_v19, %v1465_v11 }
 0x342   : > { %v1470_v37 = vrot.slane %v1449_v19, %v1469_v24  ;;  %v1474_v43 = vrot.slane %v1449_v19, %v1473_v35  ;;  %v1478_v49 = vrot.slane %v1449_v19, %v1477_v42 }
 0x343   : > { %v1491_v26 = vsub.f32 %v1374_v55, %v1454_v20  ;;  %v1492_v27 = vsub.f32 %v1376_v59, %v1458_v21  ;;  %v1493_v28 = vsub.f32 %v1378_v58, %v1462_v23  ;;  %v1494_v38 = vsub.f32 %v1380_v63, %v1466_v25 }
 0x344   : > { %v1495_v44 = vsub.f32 %v1382_v2, %v1470_v37  ;;  %v1496_v50 = vsub.f32 %v1384_v5, %v1474_v43  ;;  %v1482_v55 = vrot.slane %v1449_v19, %v1481_v47  ;;  %v1497_v58 = vsub.f32 %v1386_v8, %v1478_v49  ;;  %v2719_v43 = vld [vmem:[#allocation13 + $0x4] ss:$8 sps:$4 sm:$0xff]  }
 0x345   : > { %v1499_v30 = vmul.f32 1.442695, %v1491_v26  ;;  %v1501_v34 = vmul.f32 1.442695, %v1492_v27  ;;  %v1503_v40 = vmul.f32 1.442695, %v1493_v28  ;;  %1958 = vmatprep.subr.bf16.mxu1 %v2719_v43 }
 0x346   : > { %v1505_v46 = vmul.f32 1.442695, %v1494_v38  ;;  %v1507_v52 = vmul.f32 1.442695, %v1495_v44  ;;  %v1509_v59 = vmul.f32 1.442695, %v1496_v50  ;;  %v1498_v61 = vsub.f32 %v1388_v12, %v1482_v55 }
 0x347   : > { %2775 = vpow2.f32 %v1499_v30  ;;  %v1511_v62 = vmul.f32 1.442695, %v1497_v58  ;;  %v2722_v44 = vld [vmem:[#allocation13 + $0x14] ss:$8 sps:$4 sm:$0xff]   ;;  %v2725_v49 = vld [vmem:[#allocation13 + $0x24] ss:$8 sps:$4 sm:$0xff]  }
 0x348   : > { %2777 = vpow2.f32 %v1501_v34  ;;  %v1513_v0 = vmul.f32 1.442695, %v1498_v61  ;;  %v2723_v50 = vld [vmem:[#allocation13 + $0x20] ss:$8 sps:$4 sm:$0xff]   ;;  %v2726_v55 = vld [vmem:[#allocation13 + $0x30] ss:$8 sps:$4 sm:$0xff]  }
 0x349   : > { %2779 = vpow2.f32 %v1503_v40  ;;  %v2717_v40 = vld [vmem:[#allocation13] ss:$8 sps:$4 sm:$0xff]   ;;  %v2731_v58 = vld [vmem:[#allocation13 + $0x44] ss:$8 sps:$4 sm:$0xff]  }
 0x34a   : > { %2781 = vpow2.f32 %v1505_v46  ;;  %1959 = vmatpush1.bf16.msra.mxu1 %v2717_v40  ;;  %v2720_v46 = vld [vmem:[#allocation13 + $0x10] ss:$8 sps:$4 sm:$0xff]  }
 0x34b   : > { %2783 = vpow2.f32 %v1507_v52  ;;  %1960 = vmatprep.subr.bf16.mxu1 %v2722_v44  ;;  %v2728_v52 = vld [vmem:[#allocation13 + $0x34] ss:$8 sps:$4 sm:$0xff]  }
 0x34c   : > { %2785 = vpow2.f32 %v1509_v59  ;;  %v2729_v59 = vld [vmem:[#allocation13 + $0x40] ss:$8 sps:$4 sm:$0xff]  }
 0x34d   : > { %2787 = vpow2.f32 %v1511_v62 }
 0x34e   : > { %2789 = vpow2.f32 %v1513_v0  ;;  %1961 = vmatpush1.bf16.msra.mxu1 %v2720_v46 }
 0x34f   : > { %1962 = vmatprep.subr.bf16.mxu1 %v2725_v49 }
 0x351   : > { %v3559_v53 = vpop.eup %2775 }
 0x352   : > { %v3561_v54 = vpop.eup %2777  ;;  %1524 = vperm.xlu1 %2619, %v3559_v53   ;;  %1963 = vmatpush1.bf16.msra.mxu1 %v2723_v50 }
 0x353   : > { %1527 = vperm.xlu0 %2620, %v3561_v54   ;;  %v3567_v60 = vpop.eup %2779  ;;  %1964 = vmatprep.subr.bf16.mxu1 %v2728_v52 }
 0x354   : > { %v3570_v63 = vpop.eup %2781 }
 0x355   : > { %v3573_v31 = vpop.eup %2783 }
 0x356   : > { %1530 = vperm.xlu1 %2619, %v3567_v60   ;;  %v3576_v1 = vpop.eup %2785  ;;  %1965 = vmatpush1.bf16.msra.mxu1 %v2726_v55 }
 0x357   : > { %v3579_v2 = vpop.eup %2787  ;;  %1966 = vmatprep.subr.bf16.mxu1 %v2731_v58 }
 0x358   : > { %v3582_v3 = vpop.eup %2789 }
 0x35a   : > { %1533 = vperm.xlu1 %2619, %v3570_v63   ;;  %1967 = vmatpush1.bf16.msra.mxu1 %v2729_v59 }
 0x35e   : > { %1536 = vperm.xlu1 %2619, %v3573_v31  }
 0x362   : > { %1539 = vperm.xlu1 %2619, %v3576_v1  }
 0x366   : > { %1542 = vperm.xlu1 %2619, %v3579_v2  }
 0x36a   : > { %1545 = vperm.xlu1 %2619, %v3582_v3  }
 0x3d1   : > { %v1525_v4 = vpop.permute.xlu1 %1524 }
 0x3d2   : > { %v1528_v8 = vpop.permute.xlu0 %1527  ;;  %v1550_v12 = vrot.slane %v1525_v4, %v3525_v56 }
 0x3d3   : > { %v1554_v10 = vrot.slane %v1528_v8, %v3525_v56 }
 0x3d5   : > { %v1531_v5 = vpop.permute.xlu1 %1530  ;;  %v1579_v19 = vsel %vm1431_vm1, %v1554_v10, %v1550_v12  ;;  %v2734_v10 = vld [vmem:[#allocation13 + $0x54] ss:$8 sps:$4 sm:$0xff]   ;;  %v2732_v12 = vld [vmem:[#allocation13 + $0x50] ss:$8 sps:$4 sm:$0xff]  }
 0x3d6   : > { %v1558_v14 = vrot.slane %v1531_v5, %v3525_v56  ;;  %1968 = vmatprep.subr.bf16.mxu1 %v2734_v10 }
 0x3d7   : > { %1969 = vmatpush1.bf16.msra.mxu1 %v2732_v12 }
 0x3d8   : > { %v1580_v21 = vsel %vm1433_vm2, %v1558_v14, %v1579_v19  ;;  %v2741_v19 = vld [vmem:[#allocation13 + $0x80] ss:$8 sps:$4 sm:$0xff]  }
 0x3d9   : > { %v1534_v6 = vpop.permute.xlu1 %1533 }
 0x3da   : > { %v1562_v15 = vrot.slane %v1534_v6, %v3525_v56 }
 0x3dc   : > { %v1581_v25 = vsel %vm1435_vm3, %v1562_v15, %v1580_v21  ;;  %v2737_v15 = vld [vmem:[#allocation13 + $0x64] ss:$8 sps:$4 sm:$0xff]   ;;  %v2744_v21 = vld [vmem:[#allocation13 + $0x90] ss:$8 sps:$4 sm:$0xff]  }
 0x3dd   : > { %v1537_v7 = vpop.permute.xlu1 %1536  ;;  %1970 = vmatprep.subr.bf16.mxu1 %v2737_v15 }
 0x3de   : > { %v1566_v16 = vrot.slane %v1537_v7, %v3525_v56 }
 0x3e0   : > { %v1582_v26 = vsel %vm1437_vm4, %v1566_v16, %v1581_v25  ;;  %v2738_v16 = vld [vmem:[#allocation13 + $0x70] ss:$8 sps:$4 sm:$0xff]   ;;  %v2752_v25 = vld [vmem:[#allocation13 + $0xb4] ss:$8 sps:$4 sm:$0xff]  }
 0x3e1   : > { %v1540_v9 = vpop.permute.xlu1 %1539 }
 0x3e2   : > { %v1570_v20 = vrot.slane %v1540_v9, %v3525_v56 }
 0x3e4   : > { %v1583_v28 = vsel %vm1439_vm5, %v1570_v20, %v1582_v26  ;;  %v2746_v20 = vld [vmem:[#allocation13 + $0x94] ss:$8 sps:$4 sm:$0xff]   ;;  %v2750_v26 = vld [vmem:[#allocation13 + $0xb0] ss:$8 sps:$4 sm:$0xff]  }
 0x3e5   : > { %v1543_v17 = vpop.permute.xlu1 %1542 }
 0x3e6   : > { %v1574_v23 = vrot.slane %v1543_v17, %v3525_v56  ;;  %v2743_v17 = vld [vmem:[#allocation13 + $0x84] ss:$8 sps:$4 sm:$0xff]  }
 0x3e8   : > { %v1584_v34 = vsel %vm1441_vm6, %v1574_v23, %v1583_v28  ;;  %v2749_v23 = vld [vmem:[#allocation13 + $0xa4] ss:$8 sps:$4 sm:$0xff]  }
 0x3e9   : > { %v1546_v27 = vpop.permute.xlu1 %1545  ;;  %v2761_v28 = vld [vmem:[#allocation13 + $0xe4] ss:$8 sps:$4 sm:$0xff]  }
 0x3ea   : > { %v1578_v30 = vrot.slane %v1546_v27, %v3525_v56  ;;  %v2756_v27 = vld [vmem:[#allocation13 + $0xd0] ss:$8 sps:$4 sm:$0xff]  }
 0x3ec   : > { %v1585_v37 = vsel %vm1443_vm7, %v1578_v30, %v1584_v34  ;;  %v2764_v30 = vld [vmem:[#allocation13 + $0xf4] ss:$8 sps:$4 sm:$0xff]   ;;  %v2762_v34 = vld [vmem:[#allocation13 + $0xf0] ss:$8 sps:$4 sm:$0xff]  }
 0x3ed   : > { %v1587_v38 = vsel %vm1446_vm8, %v1585_v37, 0.0 }
 0x3ee   : > { %1588 = vadd.xlane.f32.xlu1 %v1587_v38 }
 0x47b   : > { %v1589_v61 = vpop.xlane.xlu1 %1588 }
 0x47c   : > { %2791 = vrcp.f32 %v1589_v61 }
 0x486   : > { %v2792_v62 = vpop.eup %2791 }
 0x487   : > { %v1595_v0 = vrot.slane %v2792_v62, %v3436_v33  ;;  %v1599_v5 = vrot.slane %v2792_v62, %v3445_v39  ;;  %v1603_v7 = vrot.slane %v2792_v62, %v3452_v57  ;;  %v1607_v9 = vrot.slane %v2792_v62, %v1465_v11  ;;  %v2740_v11 = vld [vmem:[#allocation13 + $0x74] ss:$8 sps:$4 sm:$0xff]  }
 0x489   : > { %v1632_v4 = vmul.f32 %v3559_v53, %v1595_v0  ;;  %v1633_v6 = vmul.f32 %v3561_v54, %v1599_v5  ;;  %v1634_v8 = vmul.f32 %v3567_v60, %v1603_v7  ;;  %v1635_v14 = vmul.f32 %v3570_v63, %v1607_v9  ;;  %v2735_v54 = vld [vmem:[#allocation13 + $0x60] ss:$8 sps:$4 sm:$0xff]  }
 0x48a   : > { %v1611_v53 = vrot.slane %v2792_v62, %v1469_v24  ;;  %v1615_v60 = vrot.slane %v2792_v62, %v1473_v35  ;;  %1971 = vmatpush1.bf16.msra.mxu1 %v2735_v54  ;;  %v1619_v24 = vrot.slane %v2792_v62, %v1477_v42  ;;  %v1623_v35 = vrot.slane %v2792_v62, %v1481_v47  ;;  %v2747_v42 = vld [vmem:[#allocation13 + $0xa0] ss:$8 sps:$4 sm:$0xff]   ;;  %v2758_v47 = vld [vmem:[#allocation13 + $0xd4] ss:$8 sps:$4 sm:$0xff]  }
 0x48b   : > { %1642 = vperm.xlu0 %2620, %v1632_v4   ;;  %1972 = vmatprep.subr.bf16.mxu1 %v2740_v11 }
 0x48c   : > { %v1636_v57 = vmul.f32 %v3573_v31, %v1611_v53  ;;  %v1637_v63 = vmul.f32 %v3576_v1, %v1615_v60  ;;  %v1638_v31 = vmul.f32 %v3579_v2, %v1619_v24  ;;  %v1639_v1 = vmul.f32 %v3582_v3, %v1623_v35  ;;  %v2755_v2 = vld [vmem:[#allocation13 + $0xc4] ss:$8 sps:$4 sm:$0xff]   ;;  %v2759_v3 = vld [vmem:[#allocation13 + $0xe0] ss:$8 sps:$4 sm:$0xff]  }
 0x48e   : > { %1973 = vmatpush1.bf16.msra.mxu1 %v2738_v16 }
 0x48f   : > { %1647 = vperm.xlu0 %2620, %v1633_v6   ;;  %1974 = vmatprep.subr.bf16.mxu1 %v2743_v17 }
 0x492   : > { %1975 = vmatpush1.bf16.msra.mxu1 %v2741_v19 }
 0x493   : > { %1652 = vperm.xlu0 %2620, %v1634_v8   ;;  %1976 = vmatprep.subr.bf16.mxu1 %v2746_v20 }
 0x496   : > { %1977 = vmatpush1.bf16.msra.mxu1 %v2744_v21 }
 0x497   : > { %1657 = vperm.xlu0 %2620, %v1635_v14   ;;  %1978 = vmatprep.subr.bf16.mxu1 %v2749_v23 }
 0x49a   : > { %1979 = vmatpush1.bf16.msra.mxu1 %v2747_v42 }
 0x49b   : > { %1662 = vperm.xlu0 %2620, %v1636_v57   ;;  %1980 = vmatprep.subr.bf16.mxu1 %v2752_v25 }
 0x49e   : > { %1981 = vmatpush1.bf16.msra.mxu1 %v2750_v26 }
 0x49f   : > { %1667 = vperm.xlu0 %2620, %v1637_v63   ;;  %1982 = vmatprep.subr.bf16.mxu1 %v2755_v2 }
 0x4a2   : > { %1983 = vmatpush1.bf16.msra.mxu1 %v2753_v32 }
 0x4a3   : > { %1672 = vperm.xlu0 %2620, %v1638_v31   ;;  %1984 = vmatprep.subr.bf16.mxu1 %v2758_v47 }
 0x4a6   : > { %1985 = vmatpush1.bf16.msra.mxu1 %v2756_v27 }
 0x4a7   : > { %1677 = vperm.xlu0 %2620, %v1639_v1   ;;  %1986 = vmatprep.subr.bf16.mxu1 %v2761_v28 }
 0x4aa   : > { %1987 = vmatpush1.bf16.msra.mxu1 %v2759_v3 }
 0x4ab   : > { %1988 = vmatprep.subr.bf16.mxu1 %v2764_v30 }
 0x4ae   : > { %1989 = vmatpush1.bf16.msra.mxu1 %v2762_v34 }
 0x50a   : > { %v1643_v37 = vpop.permute.xlu0 %1642 }
 0x50b   : > { %v1680_v44 = vmul.f32 %v1643_v37, %v3470_v18  ;;  %v2023_v14 = vrot.slane %v1643_v37, %v3525_v56 }
 0x50d   : > { %v1688_v55 = vrot.slane %v1680_v44, 4 }
 0x50e   : > { %v1648_v38 = vpop.permute.xlu0 %1647 }
 0x50f   : > { %v1681_v40 = vmul.f32 %v1648_v38, %v3484_v29  ;;  %v1689_v4 = vadd.f32 %v1688_v55, %v1680_v44  ;;  %v2027_v18 = vrot.slane %v1648_v38, %v3525_v56 }
 0x511   : > { %v1694_v49 = vrot.slane %v1681_v40, 4  ;;  %v1690_v10 = vrot.slane %v1689_v4, 2  ;;  %v2052_v11 = vsel %vm1431_vm1, %v2027_v18, %v2023_v14  ;;  %v1786_v14 = vld [vmem:[%s3822_s10] sm:$0x3] }
 0x512   : > { %v1653_v43 = vpop.permute.xlu0 %1652 }
 0x513   : > { %v1682_v46 = vmul.f32 %v1653_v43, %v3476_v22  ;;  %v1695_v61 = vadd.f32 %v1694_v49, %v1681_v40  ;;  %v2031_v12 = vrot.slane %v1653_v43, %v3525_v56  ;;  %v1691_v24 = vadd.f32 %v1690_v10, %v1689_v4 }
 0x515   : > { %v1700_v58 = vrot.slane %v1682_v46, 4  ;;  %v1696_v7 = vrot.slane %v1695_v61, 2  ;;  %v2053_v19 = vsel %vm1433_vm2, %v2031_v12, %v2052_v11  ;;  %v1692_v27 = vrot.slane %v1691_v24, 1 }
 0x516   : > { %v1658_v50 = vpop.permute.xlu0 %1657  ;;  %v1752_v12 = vpack.c.bf16 %v3458_v13, %v3458_v13 }
 0x517   : > { %v1683_v52 = vmul.f32 %v1658_v50, %v3491_v36  ;;  %v1701_v5 = vadd.f32 %v1700_v58, %v1682_v46  ;;  %v2035_v54 = vrot.slane %v1658_v50, %v3525_v56  ;;  %v1693_v55 = vadd.f32 %v1692_v27, %v1691_v24 }
 0x519   : > { %v1706_v59 = vrot.slane %v1683_v52, 4  ;;  %v1702_v36 = vrot.slane %v1701_v5, 2  ;;  %v2054_v42 = vsel %vm1435_vm3, %v2035_v54, %v2053_v19 }
 0x51a   : > { %v1663_v62 = vpop.permute.xlu0 %1662 }
 0x51b   : > { %v1684_v0 = vmul.f32 %v1663_v62, %v3498_v41  ;;  %v1707_v6 = vadd.f32 %v1706_v59, %v1683_v52  ;;  %v1697_v41 = vadd.f32 %v1696_v7, %v1695_v61  ;;  %v2039_v16 = vrot.slane %v1663_v62, %v3525_v56 }
 0x51c   : > { %v1703_v17 = vadd.f32 %v1702_v36, %v1701_v5 }
 0x51d   : > { %v1712_v29 = vrot.slane %v1684_v0, 4  ;;  %v1708_v53 = vrot.slane %v1707_v6, 2  ;;  %v1698_v23 = vrot.slane %v1697_v41, 1  ;;  %v2055_v2 = vsel %vm1437_vm4, %v2039_v16, %v2054_v42 }
 0x51e   : > { %v1668_v8 = vpop.permute.xlu0 %1667  ;;  %v1704_v28 = vrot.slane %v1703_v17, 1 }
 0x51f   : > { %v1713_v22 = vadd.f32 %v1712_v29, %v1684_v0  ;;  %v1685_v9 = vmul.f32 %v1668_v8, %v3505_v45  ;;  %v2043_v31 = vrot.slane %v1668_v8, %v3525_v56  ;;  %v1709_v35 = vadd.f32 %v1708_v53, %v1707_v6 }
 0x520   : > { %v1699_v46 = vadd.f32 %v1698_v23, %v1697_v41  ;;  %v1791_v53 = vrot.slane %v1786_v14, %v3436_v33 }
 0x521   : > { %v1718_v15 = vrot.slane %v1685_v9, 4  ;;  %v1714_v57 = vrot.slane %v1713_v22, 2  ;;  %v2056_v3 = vsel %vm1439_vm5, %v2043_v31, %v2055_v2  ;;  %v1710_v34 = vrot.slane %v1709_v35, 1 }
 0x522   : > { %v1673_v60 = vpop.permute.xlu0 %1672  ;;  %v1744_v62 = vsel %vm1431_vm1, %v1699_v46, %v1693_v55 }
 0x523   : > { %v1719_v63 = vadd.f32 %v1718_v15, %v1685_v9  ;;  %v1686_v45 = vmul.f32 %v1673_v60, %v3512_v48  ;;  %v2047_v1 = vrot.slane %v1673_v60, %v3525_v56  ;;  %v1715_v25 = vadd.f32 %v1714_v57, %v1713_v22 }
 0x524   : > { %v1711_v58 = vadd.f32 %v1710_v34, %v1709_v35  ;;  %v1795_v15 = vrot.slane %v1786_v14, %v3445_v39 }
 0x525   : > { %v1720_v20 = vrot.slane %v1719_v63, 2  ;;  %v1724_v21 = vrot.slane %v1686_v45, 4  ;;  %v2057_v38 = vsel %vm1441_vm6, %v2047_v1, %v2056_v3  ;;  %v1716_v43 = vrot.slane %v1715_v25, 1 }
 0x526   : > { %v1678_v26 = vpop.permute.xlu0 %1677 }
 0x527   : > { %v1721_v32 = vadd.f32 %v1720_v20, %v1719_v63  ;;  %v1725_v48 = vadd.f32 %v1724_v21, %v1686_v45  ;;  %v1687_v47 = vmul.f32 %v1678_v26, %v3519_v51  ;;  %v2051_v30 = vrot.slane %v1678_v26, %v3525_v56 }
 0x528   : > { %v1705_v51 = vadd.f32 %v1704_v28, %v1703_v17  ;;  %v1717_v61 = vadd.f32 %v1716_v43, %v1715_v25 }
 0x529   : > { %v1726_v37 = vrot.slane %v1725_v48, 2  ;;  %v1730_v40 = vrot.slane %v1687_v47, 4  ;;  %v2058_v44 = vsel %vm1443_vm7, %v2051_v30, %v2057_v38  ;;  %v1722_v49 = vrot.slane %v1721_v32, 1 }
 0x52a   : > { %2060 = vst.msk [vmem:[%s3872_s17] sm:$0xff] %vm1446_vm8, %v2058_v44  ;;  %v1745_v5 = vsel %vm1433_vm2, %v1705_v51, %v1744_v62  ;;  %s2929_s17 = scalar_lea.vmem %s2928_s28, 256 }
 0x52b   : > { %v1727_v50 = vadd.f32 %v1726_v37, %v1725_v48  ;;  %v1731_v52 = vadd.f32 %v1730_v40, %v1687_v47  ;;  %v1723_v0 = vadd.f32 %v1722_v49, %v1721_v32  ;;  %v1746_v29 = vsel %vm1435_vm3, %v1711_v58, %v1745_v5  ;;  %p2931_p3 = scmp.lt.s32.totalorder %s2929_s17, %s2923_s15 }
 0x52c   : > { %v1747_v8 = vsel %vm1437_vm4, %v1717_v61, %v1746_v29 }
 0x52d   : > { %v1728_v59 = vrot.slane %v1727_v50, 1  ;;  %v1732_v56 = vrot.slane %v1731_v52, 2  ;;  %v1748_v22 = vsel %vm1439_vm5, %v1723_v0, %v1747_v8  ;;  %p2932_p10 = por %p2931_p3, %p2930_p13 }
 0x52f   : > { %v1733_v4 = vadd.f32 %v1732_v56, %v1731_v52  ;;  %v1729_v6 = vadd.f32 %v1728_v59, %v1727_v50  ;;  %p2933_p6 = pnand %p2932_p10, %p2926_p12 }
 0x531   : > { %v1734_v7 = vrot.slane %v1733_v4, 1  ;;  %v1749_v9 = vsel %vm1441_vm6, %v1729_v6, %v1748_v22 }
 0x533   : > { %v1735_v18 = vadd.f32 %v1734_v7, %v1733_v4 }
 0x535   : > { %v1750_v10 = vsel %vm1443_vm7, %v1735_v18, %v1749_v9 }
 0x536   : > { %v1753_v36 = vpack.c.bf16 %v1750_v10, %v1750_v10  ;;  %2062 = vst [vmem:[#allocation4] sm:$0xff] %v1750_v10  ;;  %2018 = vst [vmem:[%s3873_s19] sm:$0xff] %v1750_v10 }
 0x538   : > { %1990 = vmatprep.mubr.bf16.mxu1 %v1753_v36 }
 0x539   : > { %1991 = vmatmul.mubr.bf16.vlgmr.msra.gmra.mrb[8].mxu1 %v1752_v12 }
 0x60c   : > { %v1992_v41 = vpop.f32.mrb[8].mxu1 }
 0x60d   : > { %v3664_v54 = vadd.f32 %v1992_v41, %v1791_v53  ;;  %v1994_v57 = vpop.f32.mrb[9].mxu1 }
 0x60e   : > { %v3666_v60 = vadd.f32 %v1994_v57, %v1795_v15  ;;  %v1996_v11 = vpop.f32.mrb[10].mxu1 }
 0x60f   : > { %v1997_v13 = vpop.f32.mrb[11].mxu1 }
 0x610   : > { %v1999_v16 = vmax.f32 %v3664_v54, %v3666_v60 }
 0x612   : > { %2000 = vmax.xlane.f32.xlu1 %v1999_v16 }
 0x69f   : > { %v3670_v63 = vpop.xlane.xlu1 %2000 }
 0x6a0   : > { %v2002_v33 = vsub.f32 %v3664_v54, %v3670_v63  ;;  %v2003_v39 = vsub.f32 %v3666_v60, %v3670_v63 }
 0x6a2   : > { %v2004_v45 = vmul.f32 1.442695, %v2002_v33  ;;  %v2006_v24 = vmul.f32 1.442695, %v2003_v39 }
 0x6a4   : > { %2793 = vpow2.f32 %v2004_v45 }
 0x6a5   : > { %2795 = vpow2.f32 %v2006_v24 }
 0x6ae   : > { %v2794_v17 = vpop.eup %2793 }
 0x6af   : > { %v2796_v19 = vpop.eup %2795 }
 0x6b0   : > { %v2008_v31 = vadd.f32 %v2796_v19, %v2794_v17 }
 0x6b2   : > { %2009 = vadd.xlane.f32.xlu0 %v2008_v31 }
 0x6b3   : > { %2936 = shalt.err (!%p2933_p6)
}
 0x6b4   : > { %s2937_s19 = scalar_lea.hbm %s3681_s1, 128  ;;  %s2941_s14 = scalar_lea.hbm %s3824_s12, 768 }
 0x6b5   : > { %p2938_p11 = scmp.ne.s32.totalorder %s3681_s1, %s2937_s19  ;;  %p2942_p2 = scmp.lt.u32.totalorder %s3681_s1, %s3824_s12 }
 0x6b6   : > { %p2943_p4 = scmp.lt.u32.totalorder %s2941_s14, %s2937_s19  ;;  %p2945_p7 = scmp.lt.u32.totalorder %s2937_s19, %s3681_s1 }
 0x6b7   : > { %p2939_p0 = pnand %p2938_p11, %p3875_p8 }
 0x6b8   : > { %p2944_p5 = por %p2943_p4, %p2942_p2 }
 0x6b9   : > { %p2940_p1 = pneg %p2939_p0 }
 0x6ba   : > { %p2946_p9 = por %p2945_p7, %p2944_p5 }
 0x6bc   : > { %p2947_p12 = pnand %p2946_p9, %p2940_p1 }
 0x6be   : > { %2950 = shalt.err (!%p2947_p12)
}
 0x6bf   : > { %2532 = dma.vmem_to_hbm [thread:$0]  (%p3875_p8), %s2107_s25, 128, %s3681_s1, %s3685_s22  }
 0x6c0   : > { %s3709_s0 = scalar_lea.hbm %s3825_s13, %s3391_s24  ;;  %s3876_s28 = scalar_lea.vmem [#allocation18], %s3375_s30 }
 0x6c1   : > { %s2119_s17 = sshll.u32 %s3876_s28, 4  ;;  %s3877_s5 = sld [smem:[#allocation37_spill]]  ;;  %s2120_s17 = int_to_ptr.vmem [resolvable:$true] %s2119_s17 }
 0x6c2   : > { %s2951_s23 = scalar_lea.vmem %s2120_s17, 128  ;;  %s3107_s16 = smov [#allocation18]  }
 0x6c3   : > { %p2952_p13 = scmp.ne.s32.totalorder %s2120_s17, %s2951_s23  ;;  %s2955_s1 = sshll.u32 %s3107_s16, 4  ;;  %s2956_s1 = int_to_ptr.vmem [resolvable:$false] %s2955_s1 }
 0x6c4   : > { %s2957_s25 = scalar_lea.vmem %s2956_s1, 256  ;;  %p2958_p6 = scmp.lt.s32.totalorder %s2120_s17, %s2956_s1 }
 0x6c5   : > { %p2953_p3 = pnand %p2952_p13, %p3875_p8  ;;  %p2959_p11 = scmp.lt.s32.totalorder %s2957_s25, %s2951_s23 }
 0x6c7   : > { %s3717_s14 = scalar_lea.hbm %s3877_s5, %s3391_s24  ;;  %p2954_p10 = pneg %p2953_p3 }
 0x6c8   : > { %p2960_p0 = por %p2959_p11, %p2958_p6 }
 0x6ca   : > { %p2961_p1 = pnand %p2960_p0, %p2954_p10 }
 0x6cc   : > { %2964 = shalt.err (!%p2961_p1)
}
 0x6cd   : > { %s2965_s24 = scalar_lea.hbm %s3709_s0, 128  ;;  %s2969_s28 = scalar_lea.hbm %s3825_s13, 768 }
 0x6ce   : > { %p2966_p2 = scmp.ne.s32.totalorder %s3709_s0, %s2965_s24  ;;  %p2970_p7 = scmp.lt.u32.totalorder %s3709_s0, %s3825_s13 }
 0x6cf   : > { %p2971_p9 = scmp.lt.u32.totalorder %s2969_s28, %s2965_s24  ;;  %p2973_p13 = scmp.lt.u32.totalorder %s2965_s24, %s3709_s0 }
 0x6d0   : > { %p2967_p4 = pnand %p2966_p2, %p3875_p8 }
 0x6d1   : > { %p2972_p12 = por %p2971_p9, %p2970_p7 }
 0x6d2   : > { %p2968_p5 = pneg %p2967_p4 }
 0x6d3   : > { %p2974_p3 = por %p2973_p13, %p2972_p12 }
 0x6d5   : > { %p2975_p10 = pnand %p2974_p3, %p2968_p5 }
 0x6d7   : > { %2978 = shalt.err (!%p2975_p10)
}
 0x6d8   : > { %2533 = dma.vmem_to_hbm [thread:$0]  (%p3875_p8), %s2120_s17, 128, %s3709_s0, %s3685_s22  }
 0x6d9   : > { %s3878_s23 = scalar_lea.vmem [#allocation19], %s3375_s30  ;;  %s2079_s1 = scalar_lea.sflag [#allocation20], %s3371_s29 }
 0x6da   : > { %s2132_s16 = sshll.u32 %s3878_s23, 4  ;;  %s3108_s24 = smov [#allocation19]   ;;  %s2133_s16 = int_to_ptr.vmem [resolvable:$true] %s2132_s16 }
 0x6db   : > { %s2979_s25 = scalar_lea.vmem %s2133_s16, 128  ;;  %s2983_s26 = sshll.u32 %s3108_s24, 4  ;;  %s2984_s26 = int_to_ptr.vmem [resolvable:$false] %s2983_s26 }
 0x6dc   : > { %p2980_p6 = scmp.ne.s32.totalorder %s2133_s16, %s2979_s25  ;;  %s2985_s15 = scalar_lea.vmem %s2984_s26, 256 }
 0x6dd   : > { %p2986_p1 = scmp.lt.s32.totalorder %s2133_s16, %s2984_s26  ;;  %p2987_p2 = scmp.lt.s32.totalorder %s2985_s15, %s2979_s25 }
 0x6de   : > { %p2981_p11 = pnand %p2980_p6, %p3875_p8 }
 0x6df   : > { %p2988_p4 = por %p2987_p2, %p2986_p1 }
 0x6e0   : > { %p2982_p0 = pneg %p2981_p11 }
 0x6e2   : > { %p2989_p5 = pnand %p2988_p4, %p2982_p0 }
 0x6e4   : > { %2992 = shalt.err (!%p2989_p5)
}
 0x6e5   : > { %s2993_s30 = scalar_lea.hbm %s3717_s14, 128  ;;  %s2997_s17 = scalar_lea.hbm %s3877_s5, 768 }
 0x6e6   : > { %p2994_p7 = scmp.ne.s32.totalorder %s3717_s14, %s2993_s30  ;;  %p2998_p13 = scmp.lt.u32.totalorder %s3717_s14, %s3877_s5 }
 0x6e7   : > { %p2999_p3 = scmp.lt.u32.totalorder %s2997_s17, %s2993_s30  ;;  %p3001_p6 = scmp.lt.u32.totalorder %s2993_s30, %s3717_s14 }
 0x6e8   : > { %p2995_p9 = pnand %p2994_p7, %p3875_p8 }
 0x6e9   : > { %p3000_p10 = por %p2999_p3, %p2998_p13 }
 0x6ea   : > { %p2996_p12 = pneg %p2995_p9 }
 0x6eb   : > { %p3002_p11 = por %p3001_p6, %p3000_p10 }
 0x6ed   : > { %p3003_p0 = pnand %p3002_p11, %p2996_p12 }
 0x6ef   : > { %3006 = shalt.err (!%p3003_p0)
}
 0x6f0   : > { %2534 = dma.vmem_to_hbm [thread:$0]  (%p3875_p8), %s2133_s16, 128, %s3717_s14, %s2079_s1  }
 0x6f1   : > { %s2455_s20 = sshll.u32 %s3209_s21, 8  ;;  %s2093_s23 = sshll.u32 %s3377_s11, 4  ;;  %s3767_s23 = int_to_ptr.vmem [resolvable:$true] %s2093_s23 }
 0x6f2   : > { %s3879_s26 = sld [smem:[#allocation36_spill]]  ;;  %s2064_s21 = scalar_lea.sflag [#allocation9], %s3371_s29 }
 0x6f3   : > { %s3007_s14 = scalar_lea.vmem %s3767_s23, 256  ;;  %s3109_s16 = smov [#allocation15]  }
 0x6f4   : > { %p3008_p1 = scmp.ne.s32.totalorder %s3767_s23, %s3007_s14  ;;  %s3011_s1 = sshll.u32 %s3109_s16, 4  ;;  %s3012_s1 = int_to_ptr.vmem [resolvable:$false] %s3011_s1 }
 0x6f5   : > { %s3013_s30 = scalar_lea.vmem %s3012_s1, 512  ;;  %p3014_p5 = scmp.lt.s32.totalorder %s3767_s23, %s3012_s1 }
 0x6f6   : > { %p3009_p2 = pnand %p3008_p1, %p3875_p8  ;;  %p3015_p7 = scmp.lt.s32.totalorder %s3013_s30, %s3007_s14 }
 0x6f8   : > { %s3765_s15 = scalar_lea.hbm %s3879_s26, %s2455_s20  ;;  %p3010_p4 = pneg %p3009_p2 }
 0x6f9   : > { %p3016_p9 = por %p3015_p7, %p3014_p5 }
 0x6fb   : > { %p3017_p12 = pnand %p3016_p9, %p3010_p4 }
 0x73f   : > { %v2010_v35 = vpop.xlane.xlu0 %2009 }
 0x740   : > { %2797 = vlog2.f32 %v2010_v35 }
 0x74a   : > { %v2798_v20 = vpop.eup %2797 }
 0x74b   : > { %v2012_v21 = vmul.f32 0.6931472, %v2798_v20 }
 0x74d   : > { %v2013_v1 = vadd.f32 %v2012_v21, %v3670_v63 }
 0x74f   : > { %v2014_v23 = vsub.f32 %v3664_v54, %v2013_v1  ;;  %v2015_v42 = vsub.f32 %v3666_v60, %v2013_v1 }
 0x751   : > { %2016 = vst [vmem:[%s3377_s11] sm:$0xff] %v2014_v23  ;;  %2017 = vst [vmem:[%s3377_s11 + $0x8] sm:$0xff] %v2015_v42 }
 0x752   : > { %3020 = shalt.err (!%p3017_p12)
}
 0x753   : > { %s3021_s29 = scalar_lea.hbm %s3765_s15, 256  ;;  %s3025_s0 = scalar_lea.hbm %s3879_s26, 1536 }
 0x754   : > { %p3022_p13 = scmp.ne.s32.totalorder %s3765_s15, %s3021_s29  ;;  %p3026_p6 = scmp.lt.u32.totalorder %s3765_s15, %s3879_s26 }
 0x755   : > { %p3027_p11 = scmp.lt.u32.totalorder %s3025_s0, %s3021_s29  ;;  %p3029_p1 = scmp.lt.u32.totalorder %s3021_s29, %s3765_s15 }
 0x756   : > { %p3023_p3 = pnand %p3022_p13, %p3875_p8 }
 0x757   : > { %p3028_p0 = por %p3027_p11, %p3026_p6 }
 0x758   : > { %p3024_p10 = pneg %p3023_p3 }
 0x759   : > { %p3030_p2 = por %p3029_p1, %p3028_p0 }
 0x75b   : > { %p3031_p4 = pnand %p3030_p2, %p3024_p10 }
 0x75d   : > { %3034 = shalt.err (!%p3031_p4)
}
 0x75e   : > { %2531 = dma.vmem_to_hbm [thread:$0]  (%p3875_p8), %s3767_s23, 256, %s3765_s15, %s2064_s21  }
 0x75f PF: > { %s3880_s19 = sld [smem:[#allocation30_spill]]  ;;  %s3881_s20 = sld [smem:[#allocation28_spill]] }
 0x760   : > { %s3882_s25 = sld [smem:[#allocation33_spill]] }
 0x765   : > { %p2573_p5 = scmp.ge.s32.totalorder %s3880_s19, 2  ;;  %s2144_s24 = sand.u32 1, %s3881_s20  }
 0x766   : > { %p3883_p7 = scmp.ne.s32.totalorder %s3882_s25, 0  ;;  %s2145_s14 = scalar_lea.sflag [#allocation9], %s2144_s24 }
 0x768   : > { %p2553_p9 = pnand %p2573_p5, %p3883_p7 }
 0x76a   : > { %3066 = dma.done.wait (!%p2553_p9), %s2145_s14, 256  }
 0x76b   : > { %3068 = vsyncadd (!%p2553_p9), %s2145_s14, 4294967040  ;;  %s3884_s16 = sadd.s32 4294967294, %s3880_s19  }
 0x76c   : > { %s2153_s1 = sand.u32 1, %s3884_s16  }
 0x76d   : > { %s2154_s30 = scalar_lea.sflag [#allocation17], %s2153_s1 }
 0x76e   : > { %3070 = dma.done.wait (!%p2553_p9), %s2154_s30, 256  }
 0x76f   : > { %3072 = vsyncadd (!%p2553_p9), %s2154_s30, 4294967040  ;;  %s2172_s27 = scalar_lea.sflag [#allocation20], %s2144_s24 }
 0x770   : > { %3074 = dma.done.wait (!%p2553_p9), %s2172_s27, 128  }
 0x771   : > { %3076 = vsyncadd (!%p2553_p9), %s2172_s27, 4294967168  ;;  %s3885_s20 = sld [smem:[#allocation31_spill]]  ;;  %s3886_s23 = sld [smem:[#allocation29_spill]] }
 0x772   : > { %s3887_s19 = sld [smem:[#allocation32_spill]]  ;;  %s3888_s0 = smov %s3083_s18 }
 0x777   : > { %p40_p8 = scmp.ge.s32.totalorder %s3885_s20, 8   ;;  %s3889_s18 = smov %s3886_s23 }
 0x779   :  { %42 = sbr.rel (!%p40_p8) target bundleno = 27 (0x1b), region = 170 }
 0x780   :  { %2177 = vsyncpa [#allocation8], 1 }
 0x781   :  { %2179 = vsyncpa [#allocation8 + $0x1], 1 }
 0x782   :  { %2180 = vsyncpa [#allocation11], 1 }
 0x783   :  { %2181 = vsyncpa [#allocation14], 1 }
 0x784   :  { %2182 = vsyncpa [#allocation9], 1 }
 0x785   :  { %2184 = vsyncpa [#allocation9 + $0x1], 1 }
 0x786   :  { %2185 = vsyncpa [#allocation17], 1 }
 0x787   :  { %2187 = vsyncpa [#allocation17 + $0x1], 1 }
 0x788   :  { %2188 = vsyncpa [#allocation20], 1 }
 0x789   :  { %2190 = vsyncpa [#allocation20 + $0x1], 1 }

</bundles_post_ra>
